<compile_context>
chip_gen: v7x
topology: tpu7x:2x2x1
jax: 0.10.0
libtpu: 0.0.40
codegen_flags: <defaults>
</compile_context>

<pallas_src>
import functools
import math

import jax
import jax.numpy as jnp
import numpy as np
from jax.experimental import pallas as pl
from jax.experimental.pallas import tpu as pltpu

INPUT_SIZE = 8
NUM_LAYERS = 3
BB = 8  # batch rows handled per grid step (one sublane tile)


# ----------------------------------------------------------------------------
# Fused kernel: 3 LSTM layers + Linear(line, 1) for one 8-row batch block.
# ----------------------------------------------------------------------------
def _fused_lstm_kernel(x_ref,
                       wih0_ref, whh0_ref, b0_ref,
                       wih1_ref, whh1_ref, b1_ref,
                       wih2_ref, whh2_ref, b2_ref,
                       wlin_ref, blin_ref,
                       out_ref,
                       proj_scr, seq_scr,
                       *, T, H, unroll):
    """Fused 3-layer LSTM + linear head.

    x_ref:    (T*BB, I)   time-major rows for this batch block (row = t*BB + b)
    wih*_ref: (in, 4H)    transposed input-hidden weights (gate order i,f,g,o)
    whh*_ref: (H, 4H)     transposed hidden-hidden weights
    b*_ref:   (1, 4H)     fused bias (b_ih + b_hh)
    wlin_ref: (1, H), blin_ref: (1, 1)
    out_ref:  (BB, 1)
    proj_scr: (T*BB, 4H)  VMEM scratch: hoisted input projection of a layer
    seq_scr:  (T*BB, H)   VMEM scratch: hidden-state sequence of a layer
    """

    def run_layer(whh_ref, store_seq):
        whh = whh_ref[...]  # loop-invariant; resident across the time loop
        # TODO(synk): hold whh in MXU weight registers across the whole time
        # loop via pltpu.matmul_push_rhs / matmul_acc_lhs / matmul_pop.

        def step(t, carry):
            h, c = carry
            row = pl.multiple_of(t * BB, BB)  # keep loads/stores sublane-aligned
            # Only the recurrent matmul sits on the serial critical path.
            gates = proj_scr[pl.ds(row, BB), :] + jnp.dot(
                h, whh, preferred_element_type=jnp.float32)
            # Two full-width EUP issues instead of four narrow per-gate ones.
            sig = jax.nn.sigmoid(gates)
            tnh = jnp.tanh(gates)
            i_g = sig[:, 0 * H:1 * H]
            f_g = sig[:, 1 * H:2 * H]
            g_g = tnh[:, 2 * H:3 * H]
            o_g = sig[:, 3 * H:4 * H]
            c_new = f_g * c + i_g * g_g
            h_new = o_g * jnp.tanh(c_new)
            if store_seq:  # last layer: hidden sequence is dead, skip stores
                seq_scr[pl.ds(row, BB), :] = h_new
            return h_new, c_new

        zero = jnp.zeros((BB, H), jnp.float32)
        h_fin, _ = jax.lax.fori_loop(0, T, step, (zero, zero), unroll=unroll)
        return h_fin

    # Layer 0: project the raw input once (single (T*BB, I) @ (I, 4H) matmul).
    proj_scr[...] = jnp.dot(x_ref[...], wih0_ref[...],
                            preferred_element_type=jnp.float32) + b0_ref[...]
    run_layer(whh0_ref, store_seq=True)

    # Layer 1: project the previous layer's full hidden sequence in one matmul.
    proj_scr[...] = jnp.dot(seq_scr[...], wih1_ref[...],
                            preferred_element_type=jnp.float32) + b1_ref[...]
    run_layer(whh1_ref, store_seq=True)

    # Layer 2 (hidden sequence not needed downstream).
    proj_scr[...] = jnp.dot(seq_scr[...], wih2_ref[...],
                            preferred_element_type=jnp.float32) + b2_ref[...]
    h_last = run_layer(whh2_ref, store_seq=False)

    # Linear head: VPU multiply + lane reduction (no MXU push for one column).
    out_ref[...] = (jnp.sum(h_last * wlin_ref[...], axis=-1, keepdims=True)
                    + blin_ref[...])


def _fused_forward(x_blocks, lstm_params, lin_w_row, lin_b, *, T, B_pad, H, I):
    nb = B_pad // BB
    unroll = math.gcd(T, 8)  # partial unroll; always divides T
    kernel = functools.partial(_fused_lstm_kernel, T=T, H=H, unroll=unroll)

    def full2d(shape):
        return pl.BlockSpec(shape, lambda i: (0,) * len(shape))

    in_specs = [pl.BlockSpec((None, T * BB, I), lambda i: (i, 0, 0))]
    args = [x_blocks]
    for lp in lstm_params:
        in_f = lp["w_ih_t"].shape[0]
        in_specs += [full2d((in_f, 4 * H)), full2d((H, 4 * H)),
                     full2d((1, 4 * H))]
        args += [lp["w_ih_t"], lp["w_hh_t"], lp["bias"]]
    in_specs += [full2d((1, H)), full2d((1, 1))]
    args += [lin_w_row, lin_b]

    # Scoped-VMEM budget: double-buffered blocks + scratch, with headroom,
    # capped at 64 MiB so the same plan also fits a v7x core.
    f32 = 4
    block_bytes = T * BB * I * f32 + BB * 1 * f32
    block_bytes += sum(int(np.prod(a.shape)) * f32 for a in args[1:])
    scratch_bytes = (T * BB * 4 * H + T * BB * H) * f32
    vmem_limit = int(min(64 << 20,
                         max(16 << 20,
                             2 * block_bytes + scratch_bytes + (2 << 20))))
    # TODO(synk): for very long sequences, time-chunk proj_scr (double-buffered)
    # instead of materializing the full (T*BB, 4H) projection.

    return pl.pallas_call(
        kernel,
        out_shape=jax.ShapeDtypeStruct((B_pad, 1), jnp.float32),
        grid_spec=pltpu.PrefetchScalarGridSpec(
            num_scalar_prefetch=0,
            grid=(nb,),
            in_specs=in_specs,
            out_specs=pl.BlockSpec((BB, 1), lambda i: (i, 0)),
            scratch_shapes=[
                pltpu.VMEM((T * BB, 4 * H), jnp.float32),  # input projection
                pltpu.VMEM((T * BB, H), jnp.float32),      # hidden sequence
            ]),
        compiler_params=pltpu.CompilerParams(
            dimension_semantics=("parallel",),
            vmem_limit_bytes=vmem_limit),
    )(*args)


# ----------------------------------------------------------------------------
# Model: 3-layer LSTM (input=8, hidden=line) + Linear(line, 1), squeeze(1)
# ----------------------------------------------------------------------------
def init_params(key, line):
    """Deterministic parameter init (uniform, like PyTorch's +-1/sqrt(H))."""
    params = {"lstm": [], "linear": {}}
    bound = 1.0 / jnp.sqrt(jnp.float32(line))
    for layer in range(NUM_LAYERS):
        in_f = INPUT_SIZE if layer == 0 else line
        key, k1, k2, k3, k4 = jax.random.split(key, 5)
        w_ih = jax.random.uniform(k1, (4 * line, in_f), jnp.float32, -bound, bound)
        w_hh = jax.random.uniform(k2, (4 * line, line), jnp.float32, -bound, bound)
        b_ih = jax.random.uniform(k3, (4 * line,), jnp.float32, -bound, bound)
        b_hh = jax.random.uniform(k4, (4 * line,), jnp.float32, -bound, bound)
        params["lstm"].append({
            "w_ih_t": w_ih.T,                           # (in_f, 4H)
            "w_hh_t": w_hh.T,                           # (H, 4H)
            "bias": (b_ih + b_hh).reshape(1, 4 * line)  # (1, 4H)
        })
    key, k1, k2 = jax.random.split(key, 3)
    params["linear"]["w_row"] = jax.random.uniform(k1, (1, line), jnp.float32,
                                                   -bound, bound)
    params["linear"]["b"] = jax.random.uniform(k2, (1, 1), jnp.float32,
                                               -bound, bound)
    return params


@jax.jit
def my_model_forward(params, x):
    """x: (B, T, 8) batch-first like the PyTorch module. Returns (B,)."""
    B, T, I = x.shape
    H = params["lstm"][0]["w_hh_t"].shape[0]
    B_pad = ((B + BB - 1) // BB) * BB
    nb = B_pad // BB

    x_tm = jnp.transpose(x.astype(jnp.float32), (1, 0, 2))      # (T, B, I)
    x_tm = jnp.pad(x_tm, ((0, 0), (0, B_pad - B), (0, 0)))      # (T, Bp, I)
    # Batch-block-major layout: block i holds rows (t*BB + b_local).
    x_blocks = (x_tm.reshape(T, nb, BB, I)
                .transpose(1, 0, 2, 3)
                .reshape(nb, T * BB, I))

    out = _fused_forward(x_blocks, params["lstm"],
                         params["linear"]["w_row"], params["linear"]["b"],
                         T=T, B_pad=B_pad, H=H, I=I)             # (Bp, 1)
    return out[:B, 0]


def _reference_forward(params, x):
    """Pure-JAX reference (PyTorch LSTM semantics) for correctness check."""
    x_tm = jnp.transpose(x.astype(jnp.float32), (1, 0, 2))
    T, B, _ = x_tm.shape
    seq = x_tm
    for lp in params["lstm"]:
        H = lp["w_hh_t"].shape[0]
        h = jnp.zeros((B, H), jnp.float32)
        c = jnp.zeros((B, H), jnp.float32)
        outs = []
        for t in range(T):
            gates = seq[t] @ lp["w_ih_t"] + h @ lp["w_hh_t"] + lp["bias"]
            i = jax.nn.sigmoid(gates[:, :H])
            f = jax.nn.sigmoid(gates[:, H:2 * H])
            g = jnp.tanh(gates[:, 2 * H:3 * H])
            o = jax.nn.sigmoid(gates[:, 3 * H:])
            c = f * c + i * g
            h = o * jnp.tanh(c)
            outs.append(h)
        seq = jnp.stack(outs)
    return (jnp.sum(seq[-1] * params["linear"]["w_row"], axis=-1)
            + params["linear"]["b"][0, 0])


if __name__ == "__main__":
    line = 32          # hidden size
    batch, seq = 2, 8  # small example shapes

    key = jax.random.PRNGKey(0)
    key, pkey, xkey = jax.random.split(key, 3)
    params = init_params(pkey, line)
    x = jax.random.normal(xkey, (batch, seq, INPUT_SIZE), jnp.float32)

    y = my_model_forward(params, x)
    jax.block_until_ready(y)
    assert y.shape == (batch,), y.shape

    y_ref = _reference_forward(params, x)
    assert np.allclose(np.asarray(y), np.asarray(y_ref), atol=1e-3, rtol=1e-3), (
        np.asarray(y), np.asarray(y_ref))
    print("KERNEL_OK")
</pallas_src>

<mosaic_0001>
module attributes {stable_mosaic.version = 11 : i64} {
  func.func @_fused_lstm_kernel(%arg0: i32, %arg1: memref<1x64x8xf32, #tpu.memory_space<vmem>>, %arg2: memref<8x128xf32, #tpu.memory_space<vmem>>, %arg3: memref<32x128xf32, #tpu.memory_space<vmem>>, %arg4: memref<1x128xf32, #tpu.memory_space<vmem>>, %arg5: memref<32x128xf32, #tpu.memory_space<vmem>>, %arg6: memref<32x128xf32, #tpu.memory_space<vmem>>, %arg7: memref<1x128xf32, #tpu.memory_space<vmem>>, %arg8: memref<32x128xf32, #tpu.memory_space<vmem>>, %arg9: memref<32x128xf32, #tpu.memory_space<vmem>>, %arg10: memref<1x128xf32, #tpu.memory_space<vmem>>, %arg11: memref<1x32xf32, #tpu.memory_space<vmem>>, %arg12: memref<1x1xf32, #tpu.memory_space<vmem>>, %arg13: memref<8x1xf32, #tpu.memory_space<vmem>>, %arg14: memref<64x128xf32, #tpu.memory_space<vmem>>, %arg15: memref<64x32xf32, #tpu.memory_space<vmem>>) attributes {dimension_semantics = [#tpu.dimension_semantics<parallel>], iteration_bounds = array<i64: 1>, scalar_prefetch = 0 : i64, scratch_operands = 2 : i64, tpu.core_type = #tpu.core_type<tc>, window_params = [{transform_indices = @transform_0, window_bounds = array<i64: 1, 64, 8>}, {pipeline_mode = #tpu.pipeline_mode<synchronous>, transform_indices = @transform_1, window_bounds = array<i64: 8, 128>}, {pipeline_mode = #tpu.pipeline_mode<synchronous>, transform_indices = @transform_2, window_bounds = array<i64: 32, 128>}, {pipeline_mode = #tpu.pipeline_mode<synchronous>, transform_indices = @transform_3, window_bounds = array<i64: 1, 128>}, {pipeline_mode = #tpu.pipeline_mode<synchronous>, transform_indices = @transform_4, window_bounds = array<i64: 32, 128>}, {pipeline_mode = #tpu.pipeline_mode<synchronous>, transform_indices = @transform_5, window_bounds = array<i64: 32, 128>}, {pipeline_mode = #tpu.pipeline_mode<synchronous>, transform_indices = @transform_6, window_bounds = array<i64: 1, 128>}, {pipeline_mode = #tpu.pipeline_mode<synchronous>, transform_indices = @transform_7, window_bounds = array<i64: 32, 128>}, {pipeline_mode = #tpu.pipeline_mode<synchronous>, transform_indices = @transform_8, window_bounds = array<i64: 32, 128>}, {pipeline_mode = #tpu.pipeline_mode<synchronous>, transform_indices = @transform_9, window_bounds = array<i64: 1, 128>}, {pipeline_mode = #tpu.pipeline_mode<synchronous>, transform_indices = @transform_10, window_bounds = array<i64: 1, 32>}, {pipeline_mode = #tpu.pipeline_mode<synchronous>, transform_indices = @transform_11, window_bounds = array<i64: 1, 1>}, {transform_indices = @transform_12, window_bounds = array<i64: 8, 1>}]} {
    %c0 = arith.constant 0 : index
    %c0_0 = arith.constant 0 : index
    %c0_1 = arith.constant 0 : index
    %0 = vector.load %arg1[%c0, %c0_0, %c0_1] : memref<1x64x8xf32, #tpu.memory_space<vmem>>, vector<1x64x8xf32>
    %1 = vector.shape_cast %0 : vector<1x64x8xf32> to vector<64x8xf32>
    %c0_2 = arith.constant 0 : index
    %c0_3 = arith.constant 0 : index
    %2 = vector.load %arg2[%c0_2, %c0_3] : memref<8x128xf32, #tpu.memory_space<vmem>>, vector<8x128xf32>
    %cst = arith.constant dense<0.000000e+00> : vector<64x128xf32>
    %3 = tpu.matmul %1, %2, %cst {dimension_numbers = #tpu.dot_dimension_numbers<[1], [0], [0], [1], [0, 0, 1, 1], [], []>} : vector<64x8xf32>, vector<8x128xf32>, vector<64x128xf32> -> vector<64x128xf32>
    %c0_4 = arith.constant 0 : index
    %c0_5 = arith.constant 0 : index
    %4 = vector.load %arg4[%c0_4, %c0_5] : memref<1x128xf32, #tpu.memory_space<vmem>>, vector<1x128xf32>
    %5 = vector.broadcast %4 : vector<1x128xf32> to vector<64x128xf32>
    %6 = arith.addf %3, %5 : vector<64x128xf32>
    %c0_6 = arith.constant 0 : index
    %c0_7 = arith.constant 0 : index
    %7 = vector.load %arg14[%c0_6, %c0_7] : memref<64x128xf32, #tpu.memory_space<vmem>>, vector<64x128xf32>
    tpu.vector_store %arg14[%c0_6, %c0_7], %6 {strides = array<i32>} : memref<64x128xf32, #tpu.memory_space<vmem>>, vector<64x128xf32>,
    %c0_8 = arith.constant 0 : index
    %c0_9 = arith.constant 0 : index
    %8 = vector.load %arg3[%c0_8, %c0_9] : memref<32x128xf32, #tpu.memory_space<vmem>>, vector<32x128xf32>
    %cst_10 = arith.constant 0.000000e+00 : f32
    %9 = vector.broadcast %cst_10 : f32 to vector<8x32xf32>
    %c0_i32 = arith.constant 0 : i32
    %c8_i32 = arith.constant 8 : i32
    %10 = arith.muli %c0_i32, %c8_i32 : i32
    %11 = tpu.assume_multiple %10, 8 : i32
    %12 = arith.index_cast %11 : i32 to index
    %c0_11 = arith.constant 0 : index
    %13 = vector.load %arg14[%12, %c0_11] : memref<64x128xf32, #tpu.memory_space<vmem>>, vector<8x128xf32>
    %cst_12 = arith.constant dense<0.000000e+00> : vector<8x128xf32>
    %14 = tpu.matmul %9, %8, %cst_12 {dimension_numbers = #tpu.dot_dimension_numbers<[1], [0], [0], [1], [0, 0, 1, 1], [], []>} : vector<8x32xf32>, vector<32x128xf32>, vector<8x128xf32> -> vector<8x128xf32>
    %15 = arith.addf %13, %14 : vector<8x128xf32>
    %16 = arith.negf %15 : vector<8x128xf32>
    %17 = math.exp %16 : vector<8x128xf32>
    %cst_13 = arith.constant 1.000000e+00 : f32
    %18 = vector.broadcast %cst_13 : f32 to vector<8x128xf32>
    %19 = arith.addf %18, %17 : vector<8x128xf32>
    %20 = arith.divf %18, %19 : vector<8x128xf32>
    %21 = math.tanh %15 : vector<8x128xf32>
    %22 = vector.extract_strided_slice %20 {offsets = [0, 0], sizes = [8, 32], strides = [1, 1]} : vector<8x128xf32> to vector<8x32xf32>
    %23 = vector.extract_strided_slice %20 {offsets = [0, 32], sizes = [8, 32], strides = [1, 1]} : vector<8x128xf32> to vector<8x32xf32>
    %24 = vector.extract_strided_slice %21 {offsets = [0, 64], sizes = [8, 32], strides = [1, 1]} : vector<8x128xf32> to vector<8x32xf32>
    %25 = vector.extract_strided_slice %20 {offsets = [0, 96], sizes = [8, 32], strides = [1, 1]} : vector<8x128xf32> to vector<8x32xf32>
    %26 = arith.mulf %23, %9 : vector<8x32xf32>
    %27 = arith.mulf %22, %24 : vector<8x32xf32>
    %28 = arith.addf %26, %27 : vector<8x32xf32>
    %29 = math.tanh %28 : vector<8x32xf32>
    %30 = arith.mulf %25, %29 : vector<8x32xf32>
    %31 = arith.index_cast %11 : i32 to index
    %c0_14 = arith.constant 0 : index
    %32 = vector.load %arg15[%31, %c0_14] : memref<64x32xf32, #tpu.memory_space<vmem>>, vector<8x32xf32>
    tpu.vector_store %arg15[%31, %c0_14], %30 {strides = array<i32>} : memref<64x32xf32, #tpu.memory_space<vmem>>, vector<8x32xf32>,
    %c1_i32 = arith.constant 1 : i32
    %c8_i32_15 = arith.constant 8 : i32
    %33 = arith.muli %c1_i32, %c8_i32_15 : i32
    %34 = tpu.assume_multiple %33, 8 : i32
    %35 = arith.index_cast %34 : i32 to index
    %c0_16 = arith.constant 0 : index
    %36 = vector.load %arg14[%35, %c0_16] : memref<64x128xf32, #tpu.memory_space<vmem>>, vector<8x128xf32>
    %cst_17 = arith.constant dense<0.000000e+00> : vector<8x128xf32>
    %37 = tpu.matmul %30, %8, %cst_17 {dimension_numbers = #tpu.dot_dimension_numbers<[1], [0], [0], [1], [0, 0, 1, 1], [], []>} : vector<8x32xf32>, vector<32x128xf32>, vector<8x128xf32> -> vector<8x128xf32>
    %38 = arith.addf %36, %37 : vector<8x128xf32>
    %39 = arith.negf %38 : vector<8x128xf32>
    %40 = math.exp %39 : vector<8x128xf32>
    %cst_18 = arith.constant 1.000000e+00 : f32
    %41 = vector.broadcast %cst_18 : f32 to vector<8x128xf32>
    %42 = arith.addf %41, %40 : vector<8x128xf32>
    %43 = arith.divf %41, %42 : vector<8x128xf32>
    %44 = math.tanh %38 : vector<8x128xf32>
    %45 = vector.extract_strided_slice %43 {offsets = [0, 0], sizes = [8, 32], strides = [1, 1]} : vector<8x128xf32> to vector<8x32xf32>
    %46 = vector.extract_strided_slice %43 {offsets = [0, 32], sizes = [8, 32], strides = [1, 1]} : vector<8x128xf32> to vector<8x32xf32>
    %47 = vector.extract_strided_slice %44 {offsets = [0, 64], sizes = [8, 32], strides = [1, 1]} : vector<8x128xf32> to vector<8x32xf32>
    %48 = vector.extract_strided_slice %43 {offsets = [0, 96], sizes = [8, 32], strides = [1, 1]} : vector<8x128xf32> to vector<8x32xf32>
    %49 = arith.mulf %46, %28 : vector<8x32xf32>
    %50 = arith.mulf %45, %47 : vector<8x32xf32>
    %51 = arith.addf %49, %50 : vector<8x32xf32>
    %52 = math.tanh %51 : vector<8x32xf32>
    %53 = arith.mulf %48, %52 : vector<8x32xf32>
    %54 = arith.index_cast %34 : i32 to index
    %c0_19 = arith.constant 0 : index
    %55 = vector.load %arg15[%54, %c0_19] : memref<64x32xf32, #tpu.memory_space<vmem>>, vector<8x32xf32>
    tpu.vector_store %arg15[%54, %c0_19], %53 {strides = array<i32>} : memref<64x32xf32, #tpu.memory_space<vmem>>, vector<8x32xf32>,
    %c2_i32 = arith.constant 2 : i32
    %c8_i32_20 = arith.constant 8 : i32
    %56 = arith.muli %c2_i32, %c8_i32_20 : i32
    %57 = tpu.assume_multiple %56, 8 : i32
    %58 = arith.index_cast %57 : i32 to index
    %c0_21 = arith.constant 0 : index
    %59 = vector.load %arg14[%58, %c0_21] : memref<64x128xf32, #tpu.memory_space<vmem>>, vector<8x128xf32>
    %cst_22 = arith.constant dense<0.000000e+00> : vector<8x128xf32>
    %60 = tpu.matmul %53, %8, %cst_22 {dimension_numbers = #tpu.dot_dimension_numbers<[1], [0], [0], [1], [0, 0, 1, 1], [], []>} : vector<8x32xf32>, vector<32x128xf32>, vector<8x128xf32> -> vector<8x128xf32>
    %61 = arith.addf %59, %60 : vector<8x128xf32>
    %62 = arith.negf %61 : vector<8x128xf32>
    %63 = math.exp %62 : vector<8x128xf32>
    %cst_23 = arith.constant 1.000000e+00 : f32
    %64 = vector.broadcast %cst_23 : f32 to vector<8x128xf32>
    %65 = arith.addf %64, %63 : vector<8x128xf32>
    %66 = arith.divf %64, %65 : vector<8x128xf32>
    %67 = math.tanh %61 : vector<8x128xf32>
    %68 = vector.extract_strided_slice %66 {offsets = [0, 0], sizes = [8, 32], strides = [1, 1]} : vector<8x128xf32> to vector<8x32xf32>
    %69 = vector.extract_strided_slice %66 {offsets = [0, 32], sizes = [8, 32], strides = [1, 1]} : vector<8x128xf32> to vector<8x32xf32>
    %70 = vector.extract_strided_slice %67 {offsets = [0, 64], sizes = [8, 32], strides = [1, 1]} : vector<8x128xf32> to vector<8x32xf32>
    %71 = vector.extract_strided_slice %66 {offsets = [0, 96], sizes = [8, 32], strides = [1, 1]} : vector<8x128xf32> to vector<8x32xf32>
    %72 = arith.mulf %69, %51 : vector<8x32xf32>
    %73 = arith.mulf %68, %70 : vector<8x32xf32>
    %74 = arith.addf %72, %73 : vector<8x32xf32>
    %75 = math.tanh %74 : vector<8x32xf32>
    %76 = arith.mulf %71, %75 : vector<8x32xf32>
    %77 = arith.index_cast %57 : i32 to index
    %c0_24 = arith.constant 0 : index
    %78 = vector.load %arg15[%77, %c0_24] : memref<64x32xf32, #tpu.memory_space<vmem>>, vector<8x32xf32>
    tpu.vector_store %arg15[%77, %c0_24], %76 {strides = array<i32>} : memref<64x32xf32, #tpu.memory_space<vmem>>, vector<8x32xf32>,
    %c3_i32 = arith.constant 3 : i32
    %c8_i32_25 = arith.constant 8 : i32
    %79 = arith.muli %c3_i32, %c8_i32_25 : i32
    %80 = tpu.assume_multiple %79, 8 : i32
    %81 = arith.index_cast %80 : i32 to index
    %c0_26 = arith.constant 0 : index
    %82 = vector.load %arg14[%81, %c0_26] : memref<64x128xf32, #tpu.memory_space<vmem>>, vector<8x128xf32>
    %cst_27 = arith.constant dense<0.000000e+00> : vector<8x128xf32>
    %83 = tpu.matmul %76, %8, %cst_27 {dimension_numbers = #tpu.dot_dimension_numbers<[1], [0], [0], [1], [0, 0, 1, 1], [], []>} : vector<8x32xf32>, vector<32x128xf32>, vector<8x128xf32> -> vector<8x128xf32>
    %84 = arith.addf %82, %83 : vector<8x128xf32>
    %85 = arith.negf %84 : vector<8x128xf32>
    %86 = math.exp %85 : vector<8x128xf32>
    %cst_28 = arith.constant 1.000000e+00 : f32
    %87 = vector.broadcast %cst_28 : f32 to vector<8x128xf32>
    %88 = arith.addf %87, %86 : vector<8x128xf32>
    %89 = arith.divf %87, %88 : vector<8x128xf32>
    %90 = math.tanh %84 : vector<8x128xf32>
    %91 = vector.extract_strided_slice %89 {offsets = [0, 0], sizes = [8, 32], strides = [1, 1]} : vector<8x128xf32> to vector<8x32xf32>
    %92 = vector.extract_strided_slice %89 {offsets = [0, 32], sizes = [8, 32], strides = [1, 1]} : vector<8x128xf32> to vector<8x32xf32>
    %93 = vector.extract_strided_slice %90 {offsets = [0, 64], sizes = [8, 32], strides = [1, 1]} : vector<8x128xf32> to vector<8x32xf32>
    %94 = vector.extract_strided_slice %89 {offsets = [0, 96], sizes = [8, 32], strides = [1, 1]} : vector<8x128xf32> to vector<8x32xf32>
    %95 = arith.mulf %92, %74 : vector<8x32xf32>
    %96 = arith.mulf %91, %93 : vector<8x32xf32>
    %97 = arith.addf %95, %96 : vector<8x32xf32>
    %98 = math.tanh %97 : vector<8x32xf32>
    %99 = arith.mulf %94, %98 : vector<8x32xf32>
    %100 = arith.index_cast %80 : i32 to index
    %c0_29 = arith.constant 0 : index
    %101 = vector.load %arg15[%100, %c0_29] : memref<64x32xf32, #tpu.memory_space<vmem>>, vector<8x32xf32>
    tpu.vector_store %arg15[%100, %c0_29], %99 {strides = array<i32>} : memref<64x32xf32, #tpu.memory_space<vmem>>, vector<8x32xf32>,
    %c4_i32 = arith.constant 4 : i32
    %c8_i32_30 = arith.constant 8 : i32
    %102 = arith.muli %c4_i32, %c8_i32_30 : i32
    %103 = tpu.assume_multiple %102, 8 : i32
    %104 = arith.index_cast %103 : i32 to index
    %c0_31 = arith.constant 0 : index
    %105 = vector.load %arg14[%104, %c0_31] : memref<64x128xf32, #tpu.memory_space<vmem>>, vector<8x128xf32>
    %cst_32 = arith.constant dense<0.000000e+00> : vector<8x128xf32>
    %106 = tpu.matmul %99, %8, %cst_32 {dimension_numbers = #tpu.dot_dimension_numbers<[1], [0], [0], [1], [0, 0, 1, 1], [], []>} : vector<8x32xf32>, vector<32x128xf32>, vector<8x128xf32> -> vector<8x128xf32>
    %107 = arith.addf %105, %106 : vector<8x128xf32>
    %108 = arith.negf %107 : vector<8x128xf32>
    %109 = math.exp %108 : vector<8x128xf32>
    %cst_33 = arith.constant 1.000000e+00 : f32
    %110 = vector.broadcast %cst_33 : f32 to vector<8x128xf32>
    %111 = arith.addf %110, %109 : vector<8x128xf32>
    %112 = arith.divf %110, %111 : vector<8x128xf32>
    %113 = math.tanh %107 : vector<8x128xf32>
    %114 = vector.extract_strided_slice %112 {offsets = [0, 0], sizes = [8, 32], strides = [1, 1]} : vector<8x128xf32> to vector<8x32xf32>
    %115 = vector.extract_strided_slice %112 {offsets = [0, 32], sizes = [8, 32], strides = [1, 1]} : vector<8x128xf32> to vector<8x32xf32>
    %116 = vector.extract_strided_slice %113 {offsets = [0, 64], sizes = [8, 32], strides = [1, 1]} : vector<8x128xf32> to vector<8x32xf32>
    %117 = vector.extract_strided_slice %112 {offsets = [0, 96], sizes = [8, 32], strides = [1, 1]} : vector<8x128xf32> to vector<8x32xf32>
    %118 = arith.mulf %115, %97 : vector<8x32xf32>
    %119 = arith.mulf %114, %116 : vector<8x32xf32>
    %120 = arith.addf %118, %119 : vector<8x32xf32>
    %121 = math.tanh %120 : vector<8x32xf32>
    %122 = arith.mulf %117, %121 : vector<8x32xf32>
    %123 = arith.index_cast %103 : i32 to index
    %c0_34 = arith.constant 0 : index
    %124 = vector.load %arg15[%123, %c0_34] : memref<64x32xf32, #tpu.memory_space<vmem>>, vector<8x32xf32>
    tpu.vector_store %arg15[%123, %c0_34], %122 {strides = array<i32>} : memref<64x32xf32, #tpu.memory_space<vmem>>, vector<8x32xf32>,
    %c5_i32 = arith.constant 5 : i32
    %c8_i32_35 = arith.constant 8 : i32
    %125 = arith.muli %c5_i32, %c8_i32_35 : i32
    %126 = tpu.assume_multiple %125, 8 : i32
    %127 = arith.index_cast %126 : i32 to index
    %c0_36 = arith.constant 0 : index
    %128 = vector.load %arg14[%127, %c0_36] : memref<64x128xf32, #tpu.memory_space<vmem>>, vector<8x128xf32>
    %cst_37 = arith.constant dense<0.000000e+00> : vector<8x128xf32>
    %129 = tpu.matmul %122, %8, %cst_37 {dimension_numbers = #tpu.dot_dimension_numbers<[1], [0], [0], [1], [0, 0, 1, 1], [], []>} : vector<8x32xf32>, vector<32x128xf32>, vector<8x128xf32> -> vector<8x128xf32>
    %130 = arith.addf %128, %129 : vector<8x128xf32>
    %131 = arith.negf %130 : vector<8x128xf32>
    %132 = math.exp %131 : vector<8x128xf32>
    %cst_38 = arith.constant 1.000000e+00 : f32
    %133 = vector.broadcast %cst_38 : f32 to vector<8x128xf32>
    %134 = arith.addf %133, %132 : vector<8x128xf32>
    %135 = arith.divf %133, %134 : vector<8x128xf32>
    %136 = math.tanh %130 : vector<8x128xf32>
    %137 = vector.extract_strided_slice %135 {offsets = [0, 0], sizes = [8, 32], strides = [1, 1]} : vector<8x128xf32> to vector<8x32xf32>
    %138 = vector.extract_strided_slice %135 {offsets = [0, 32], sizes = [8, 32], strides = [1, 1]} : vector<8x128xf32> to vector<8x32xf32>
    %139 = vector.extract_strided_slice %136 {offsets = [0, 64], sizes = [8, 32], strides = [1, 1]} : vector<8x128xf32> to vector<8x32xf32>
    %140 = vector.extract_strided_slice %135 {offsets = [0, 96], sizes = [8, 32], strides = [1, 1]} : vector<8x128xf32> to vector<8x32xf32>
    %141 = arith.mulf %138, %120 : vector<8x32xf32>
    %142 = arith.mulf %137, %139 : vector<8x32xf32>
    %143 = arith.addf %141, %142 : vector<8x32xf32>
    %144 = math.tanh %143 : vector<8x32xf32>
    %145 = arith.mulf %140, %144 : vector<8x32xf32>
    %146 = arith.index_cast %126 : i32 to index
    %c0_39 = arith.constant 0 : index
    %147 = vector.load %arg15[%146, %c0_39] : memref<64x32xf32, #tpu.memory_space<vmem>>, vector<8x32xf32>
    tpu.vector_store %arg15[%146, %c0_39], %145 {strides = array<i32>} : memref<64x32xf32, #tpu.memory_space<vmem>>, vector<8x32xf32>,
    %c6_i32 = arith.constant 6 : i32
    %c8_i32_40 = arith.constant 8 : i32
    %148 = arith.muli %c6_i32, %c8_i32_40 : i32
    %149 = tpu.assume_multiple %148, 8 : i32
    %150 = arith.index_cast %149 : i32 to index
    %c0_41 = arith.constant 0 : index
    %151 = vector.load %arg14[%150, %c0_41] : memref<64x128xf32, #tpu.memory_space<vmem>>, vector<8x128xf32>
    %cst_42 = arith.constant dense<0.000000e+00> : vector<8x128xf32>
    %152 = tpu.matmul %145, %8, %cst_42 {dimension_numbers = #tpu.dot_dimension_numbers<[1], [0], [0], [1], [0, 0, 1, 1], [], []>} : vector<8x32xf32>, vector<32x128xf32>, vector<8x128xf32> -> vector<8x128xf32>
    %153 = arith.addf %151, %152 : vector<8x128xf32>
    %154 = arith.negf %153 : vector<8x128xf32>
    %155 = math.exp %154 : vector<8x128xf32>
    %cst_43 = arith.constant 1.000000e+00 : f32
    %156 = vector.broadcast %cst_43 : f32 to vector<8x128xf32>
    %157 = arith.addf %156, %155 : vector<8x128xf32>
    %158 = arith.divf %156, %157 : vector<8x128xf32>
    %159 = math.tanh %153 : vector<8x128xf32>
    %160 = vector.extract_strided_slice %158 {offsets = [0, 0], sizes = [8, 32], strides = [1, 1]} : vector<8x128xf32> to vector<8x32xf32>
    %161 = vector.extract_strided_slice %158 {offsets = [0, 32], sizes = [8, 32], strides = [1, 1]} : vector<8x128xf32> to vector<8x32xf32>
    %162 = vector.extract_strided_slice %159 {offsets = [0, 64], sizes = [8, 32], strides = [1, 1]} : vector<8x128xf32> to vector<8x32xf32>
    %163 = vector.extract_strided_slice %158 {offsets = [0, 96], sizes = [8, 32], strides = [1, 1]} : vector<8x128xf32> to vector<8x32xf32>
    %164 = arith.mulf %161, %143 : vector<8x32xf32>
    %165 = arith.mulf %160, %162 : vector<8x32xf32>
    %166 = arith.addf %164, %165 : vector<8x32xf32>
    %167 = math.tanh %166 : vector<8x32xf32>
    %168 = arith.mulf %163, %167 : vector<8x32xf32>
    %169 = arith.index_cast %149 : i32 to index
    %c0_44 = arith.constant 0 : index
    %170 = vector.load %arg15[%169, %c0_44] : memref<64x32xf32, #tpu.memory_space<vmem>>, vector<8x32xf32>
    tpu.vector_store %arg15[%169, %c0_44], %168 {strides = array<i32>} : memref<64x32xf32, #tpu.memory_space<vmem>>, vector<8x32xf32>,
    %c7_i32 = arith.constant 7 : i32
    %c8_i32_45 = arith.constant 8 : i32
    %171 = arith.muli %c7_i32, %c8_i32_45 : i32
    %172 = tpu.assume_multiple %171, 8 : i32
    %173 = arith.index_cast %172 : i32 to index
    %c0_46 = arith.constant 0 : index
    %174 = vector.load %arg14[%173, %c0_46] : memref<64x128xf32, #tpu.memory_space<vmem>>, vector<8x128xf32>
    %cst_47 = arith.constant dense<0.000000e+00> : vector<8x128xf32>
    %175 = tpu.matmul %168, %8, %cst_47 {dimension_numbers = #tpu.dot_dimension_numbers<[1], [0], [0], [1], [0, 0, 1, 1], [], []>} : vector<8x32xf32>, vector<32x128xf32>, vector<8x128xf32> -> vector<8x128xf32>
    %176 = arith.addf %174, %175 : vector<8x128xf32>
    %177 = arith.negf %176 : vector<8x128xf32>
    %178 = math.exp %177 : vector<8x128xf32>
    %cst_48 = arith.constant 1.000000e+00 : f32
    %179 = vector.broadcast %cst_48 : f32 to vector<8x128xf32>
    %180 = arith.addf %179, %178 : vector<8x128xf32>
    %181 = arith.divf %179, %180 : vector<8x128xf32>
    %182 = math.tanh %176 : vector<8x128xf32>
    %183 = vector.extract_strided_slice %181 {offsets = [0, 0], sizes = [8, 32], strides = [1, 1]} : vector<8x128xf32> to vector<8x32xf32>
    %184 = vector.extract_strided_slice %181 {offsets = [0, 32], sizes = [8, 32], strides = [1, 1]} : vector<8x128xf32> to vector<8x32xf32>
    %185 = vector.extract_strided_slice %182 {offsets = [0, 64], sizes = [8, 32], strides = [1, 1]} : vector<8x128xf32> to vector<8x32xf32>
    %186 = vector.extract_strided_slice %181 {offsets = [0, 96], sizes = [8, 32], strides = [1, 1]} : vector<8x128xf32> to vector<8x32xf32>
    %187 = arith.mulf %184, %166 : vector<8x32xf32>
    %188 = arith.mulf %183, %185 : vector<8x32xf32>
    %189 = arith.addf %187, %188 : vector<8x32xf32>
    %190 = math.tanh %189 : vector<8x32xf32>
    %191 = arith.mulf %186, %190 : vector<8x32xf32>
    %192 = arith.index_cast %172 : i32 to index
    %c0_49 = arith.constant 0 : index
    %193 = vector.load %arg15[%192, %c0_49] : memref<64x32xf32, #tpu.memory_space<vmem>>, vector<8x32xf32>
    tpu.vector_store %arg15[%192, %c0_49], %191 {strides = array<i32>} : memref<64x32xf32, #tpu.memory_space<vmem>>, vector<8x32xf32>,
    %c8_i32_50 = arith.constant 8 : i32
    %c0_51 = arith.constant 0 : index
    %c0_52 = arith.constant 0 : index
    %194 = vector.load %arg15[%c0_51, %c0_52] : memref<64x32xf32, #tpu.memory_space<vmem>>, vector<64x32xf32>
    %c0_53 = arith.constant 0 : index
    %c0_54 = arith.constant 0 : index
    %195 = vector.load %arg5[%c0_53, %c0_54] : memref<32x128xf32, #tpu.memory_space<vmem>>, vector<32x128xf32>
    %cst_55 = arith.constant dense<0.000000e+00> : vector<64x128xf32>
    %196 = tpu.matmul %194, %195, %cst_55 {dimension_numbers = #tpu.dot_dimension_numbers<[1], [0], [0], [1], [0, 0, 1, 1], [], []>} : vector<64x32xf32>, vector<32x128xf32>, vector<64x128xf32> -> vector<64x128xf32>
    %c0_56 = arith.constant 0 : index
    %c0_57 = arith.constant 0 : index
    %197 = vector.load %arg7[%c0_56, %c0_57] : memref<1x128xf32, #tpu.memory_space<vmem>>, vector<1x128xf32>
    %198 = vector.broadcast %197 : vector<1x128xf32> to vector<64x128xf32>
    %199 = arith.addf %196, %198 : vector<64x128xf32>
    %c0_58 = arith.constant 0 : index
    %c0_59 = arith.constant 0 : index
    %200 = vector.load %arg14[%c0_58, %c0_59] : memref<64x128xf32, #tpu.memory_space<vmem>>, vector<64x128xf32>
    tpu.vector_store %arg14[%c0_58, %c0_59], %199 {strides = array<i32>} : memref<64x128xf32, #tpu.memory_space<vmem>>, vector<64x128xf32>,
    %c0_60 = arith.constant 0 : index
    %c0_61 = arith.constant 0 : index
    %201 = vector.load %arg6[%c0_60, %c0_61] : memref<32x128xf32, #tpu.memory_space<vmem>>, vector<32x128xf32>
    %cst_62 = arith.constant 0.000000e+00 : f32
    %202 = vector.broadcast %cst_62 : f32 to vector<8x32xf32>
    %c0_i32_63 = arith.constant 0 : i32
    %c8_i32_64 = arith.constant 8 : i32
    %203 = arith.muli %c0_i32_63, %c8_i32_64 : i32
    %204 = tpu.assume_multiple %203, 8 : i32
    %205 = arith.index_cast %204 : i32 to index
    %c0_65 = arith.constant 0 : index
    %206 = vector.load %arg14[%205, %c0_65] : memref<64x128xf32, #tpu.memory_space<vmem>>, vector<8x128xf32>
    %cst_66 = arith.constant dense<0.000000e+00> : vector<8x128xf32>
    %207 = tpu.matmul %202, %201, %cst_66 {dimension_numbers = #tpu.dot_dimension_numbers<[1], [0], [0], [1], [0, 0, 1, 1], [], []>} : vector<8x32xf32>, vector<32x128xf32>, vector<8x128xf32> -> vector<8x128xf32>
    %208 = arith.addf %206, %207 : vector<8x128xf32>
    %209 = arith.negf %208 : vector<8x128xf32>
    %210 = math.exp %209 : vector<8x128xf32>
    %cst_67 = arith.constant 1.000000e+00 : f32
    %211 = vector.broadcast %cst_67 : f32 to vector<8x128xf32>
    %212 = arith.addf %211, %210 : vector<8x128xf32>
    %213 = arith.divf %211, %212 : vector<8x128xf32>
    %214 = math.tanh %208 : vector<8x128xf32>
    %215 = vector.extract_strided_slice %213 {offsets = [0, 0], sizes = [8, 32], strides = [1, 1]} : vector<8x128xf32> to vector<8x32xf32>
    %216 = vector.extract_strided_slice %213 {offsets = [0, 32], sizes = [8, 32], strides = [1, 1]} : vector<8x128xf32> to vector<8x32xf32>
    %217 = vector.extract_strided_slice %214 {offsets = [0, 64], sizes = [8, 32], strides = [1, 1]} : vector<8x128xf32> to vector<8x32xf32>
    %218 = vector.extract_strided_slice %213 {offsets = [0, 96], sizes = [8, 32], strides = [1, 1]} : vector<8x128xf32> to vector<8x32xf32>
    %219 = arith.mulf %216, %202 : vector<8x32xf32>
    %220 = arith.mulf %215, %217 : vector<8x32xf32>
    %221 = arith.addf %219, %220 : vector<8x32xf32>
    %222 = math.tanh %221 : vector<8x32xf32>
    %223 = arith.mulf %218, %222 : vector<8x32xf32>
    %224 = arith.index_cast %204 : i32 to index
    %c0_68 = arith.constant 0 : index
    %225 = vector.load %arg15[%224, %c0_68] : memref<64x32xf32, #tpu.memory_space<vmem>>, vector<8x32xf32>
    tpu.vector_store %arg15[%224, %c0_68], %223 {strides = array<i32>} : memref<64x32xf32, #tpu.memory_space<vmem>>, vector<8x32xf32>,
    %c1_i32_69 = arith.constant 1 : i32
    %c8_i32_70 = arith.constant 8 : i32
    %226 = arith.muli %c1_i32_69, %c8_i32_70 : i32
    %227 = tpu.assume_multiple %226, 8 : i32
    %228 = arith.index_cast %227 : i32 to index
    %c0_71 = arith.constant 0 : index
    %229 = vector.load %arg14[%228, %c0_71] : memref<64x128xf32, #tpu.memory_space<vmem>>, vector<8x128xf32>
    %cst_72 = arith.constant dense<0.000000e+00> : vector<8x128xf32>
    %230 = tpu.matmul %223, %201, %cst_72 {dimension_numbers = #tpu.dot_dimension_numbers<[1], [0], [0], [1], [0, 0, 1, 1], [], []>} : vector<8x32xf32>, vector<32x128xf32>, vector<8x128xf32> -> vector<8x128xf32>
    %231 = arith.addf %229, %230 : vector<8x128xf32>
    %232 = arith.negf %231 : vector<8x128xf32>
    %233 = math.exp %232 : vector<8x128xf32>
    %cst_73 = arith.constant 1.000000e+00 : f32
    %234 = vector.broadcast %cst_73 : f32 to vector<8x128xf32>
    %235 = arith.addf %234, %233 : vector<8x128xf32>
    %236 = arith.divf %234, %235 : vector<8x128xf32>
    %237 = math.tanh %231 : vector<8x128xf32>
    %238 = vector.extract_strided_slice %236 {offsets = [0, 0], sizes = [8, 32], strides = [1, 1]} : vector<8x128xf32> to vector<8x32xf32>
    %239 = vector.extract_strided_slice %236 {offsets = [0, 32], sizes = [8, 32], strides = [1, 1]} : vector<8x128xf32> to vector<8x32xf32>
    %240 = vector.extract_strided_slice %237 {offsets = [0, 64], sizes = [8, 32], strides = [1, 1]} : vector<8x128xf32> to vector<8x32xf32>
    %241 = vector.extract_strided_slice %236 {offsets = [0, 96], sizes = [8, 32], strides = [1, 1]} : vector<8x128xf32> to vector<8x32xf32>
    %242 = arith.mulf %239, %221 : vector<8x32xf32>
    %243 = arith.mulf %238, %240 : vector<8x32xf32>
    %244 = arith.addf %242, %243 : vector<8x32xf32>
    %245 = math.tanh %244 : vector<8x32xf32>
    %246 = arith.mulf %241, %245 : vector<8x32xf32>
    %247 = arith.index_cast %227 : i32 to index
    %c0_74 = arith.constant 0 : index
    %248 = vector.load %arg15[%247, %c0_74] : memref<64x32xf32, #tpu.memory_space<vmem>>, vector<8x32xf32>
    tpu.vector_store %arg15[%247, %c0_74], %246 {strides = array<i32>} : memref<64x32xf32, #tpu.memory_space<vmem>>, vector<8x32xf32>,
    %c2_i32_75 = arith.constant 2 : i32
    %c8_i32_76 = arith.constant 8 : i32
    %249 = arith.muli %c2_i32_75, %c8_i32_76 : i32
    %250 = tpu.assume_multiple %249, 8 : i32
    %251 = arith.index_cast %250 : i32 to index
    %c0_77 = arith.constant 0 : index
    %252 = vector.load %arg14[%251, %c0_77] : memref<64x128xf32, #tpu.memory_space<vmem>>, vector<8x128xf32>
    %cst_78 = arith.constant dense<0.000000e+00> : vector<8x128xf32>
    %253 = tpu.matmul %246, %201, %cst_78 {dimension_numbers = #tpu.dot_dimension_numbers<[1], [0], [0], [1], [0, 0, 1, 1], [], []>} : vector<8x32xf32>, vector<32x128xf32>, vector<8x128xf32> -> vector<8x128xf32>
    %254 = arith.addf %252, %253 : vector<8x128xf32>
    %255 = arith.negf %254 : vector<8x128xf32>
    %256 = math.exp %255 : vector<8x128xf32>
    %cst_79 = arith.constant 1.000000e+00 : f32
    %257 = vector.broadcast %cst_79 : f32 to vector<8x128xf32>
    %258 = arith.addf %257, %256 : vector<8x128xf32>
    %259 = arith.divf %257, %258 : vector<8x128xf32>
    %260 = math.tanh %254 : vector<8x128xf32>
    %261 = vector.extract_strided_slice %259 {offsets = [0, 0], sizes = [8, 32], strides = [1, 1]} : vector<8x128xf32> to vector<8x32xf32>
    %262 = vector.extract_strided_slice %259 {offsets = [0, 32], sizes = [8, 32], strides = [1, 1]} : vector<8x128xf32> to vector<8x32xf32>
    %263 = vector.extract_strided_slice %260 {offsets = [0, 64], sizes = [8, 32], strides = [1, 1]} : vector<8x128xf32> to vector<8x32xf32>
    %264 = vector.extract_strided_slice %259 {offsets = [0, 96], sizes = [8, 32], strides = [1, 1]} : vector<8x128xf32> to vector<8x32xf32>
    %265 = arith.mulf %262, %244 : vector<8x32xf32>
    %266 = arith.mulf %261, %263 : vector<8x32xf32>
    %267 = arith.addf %265, %266 : vector<8x32xf32>
    %268 = math.tanh %267 : vector<8x32xf32>
    %269 = arith.mulf %264, %268 : vector<8x32xf32>
    %270 = arith.index_cast %250 : i32 to index
    %c0_80 = arith.constant 0 : index
    %271 = vector.load %arg15[%270, %c0_80] : memref<64x32xf32, #tpu.memory_space<vmem>>, vector<8x32xf32>
    tpu.vector_store %arg15[%270, %c0_80], %269 {strides = array<i32>} : memref<64x32xf32, #tpu.memory_space<vmem>>, vector<8x32xf32>,
    %c3_i32_81 = arith.constant 3 : i32
    %c8_i32_82 = arith.constant 8 : i32
    %272 = arith.muli %c3_i32_81, %c8_i32_82 : i32
    %273 = tpu.assume_multiple %272, 8 : i32
    %274 = arith.index_cast %273 : i32 to index
    %c0_83 = arith.constant 0 : index
    %275 = vector.load %arg14[%274, %c0_83] : memref<64x128xf32, #tpu.memory_space<vmem>>, vector<8x128xf32>
    %cst_84 = arith.constant dense<0.000000e+00> : vector<8x128xf32>
    %276 = tpu.matmul %269, %201, %cst_84 {dimension_numbers = #tpu.dot_dimension_numbers<[1], [0], [0], [1], [0, 0, 1, 1], [], []>} : vector<8x32xf32>, vector<32x128xf32>, vector<8x128xf32> -> vector<8x128xf32>
    %277 = arith.addf %275, %276 : vector<8x128xf32>
    %278 = arith.negf %277 : vector<8x128xf32>
    %279 = math.exp %278 : vector<8x128xf32>
    %cst_85 = arith.constant 1.000000e+00 : f32
    %280 = vector.broadcast %cst_85 : f32 to vector<8x128xf32>
    %281 = arith.addf %280, %279 : vector<8x128xf32>
    %282 = arith.divf %280, %281 : vector<8x128xf32>
    %283 = math.tanh %277 : vector<8x128xf32>
    %284 = vector.extract_strided_slice %282 {offsets = [0, 0], sizes = [8, 32], strides = [1, 1]} : vector<8x128xf32> to vector<8x32xf32>
    %285 = vector.extract_strided_slice %282 {offsets = [0, 32], sizes = [8, 32], strides = [1, 1]} : vector<8x128xf32> to vector<8x32xf32>
    %286 = vector.extract_strided_slice %283 {offsets = [0, 64], sizes = [8, 32], strides = [1, 1]} : vector<8x128xf32> to vector<8x32xf32>
    %287 = vector.extract_strided_slice %282 {offsets = [0, 96], sizes = [8, 32], strides = [1, 1]} : vector<8x128xf32> to vector<8x32xf32>
    %288 = arith.mulf %285, %267 : vector<8x32xf32>
    %289 = arith.mulf %284, %286 : vector<8x32xf32>
    %290 = arith.addf %288, %289 : vector<8x32xf32>
    %291 = math.tanh %290 : vector<8x32xf32>
    %292 = arith.mulf %287, %291 : vector<8x32xf32>
    %293 = arith.index_cast %273 : i32 to index
    %c0_86 = arith.constant 0 : index
    %294 = vector.load %arg15[%293, %c0_86] : memref<64x32xf32, #tpu.memory_space<vmem>>, vector<8x32xf32>
    tpu.vector_store %arg15[%293, %c0_86], %292 {strides = array<i32>} : memref<64x32xf32, #tpu.memory_space<vmem>>, vector<8x32xf32>,
    %c4_i32_87 = arith.constant 4 : i32
    %c8_i32_88 = arith.constant 8 : i32
    %295 = arith.muli %c4_i32_87, %c8_i32_88 : i32
    %296 = tpu.assume_multiple %295, 8 : i32
    %297 = arith.index_cast %296 : i32 to index
    %c0_89 = arith.constant 0 : index
    %298 = vector.load %arg14[%297, %c0_89] : memref<64x128xf32, #tpu.memory_space<vmem>>, vector<8x128xf32>
    %cst_90 = arith.constant dense<0.000000e+00> : vector<8x128xf32>
    %299 = tpu.matmul %292, %201, %cst_90 {dimension_numbers = #tpu.dot_dimension_numbers<[1], [0], [0], [1], [0, 0, 1, 1], [], []>} : vector<8x32xf32>, vector<32x128xf32>, vector<8x128xf32> -> vector<8x128xf32>
    %300 = arith.addf %298, %299 : vector<8x128xf32>
    %301 = arith.negf %300 : vector<8x128xf32>
    %302 = math.exp %301 : vector<8x128xf32>
    %cst_91 = arith.constant 1.000000e+00 : f32
    %303 = vector.broadcast %cst_91 : f32 to vector<8x128xf32>
    %304 = arith.addf %303, %302 : vector<8x128xf32>
    %305 = arith.divf %303, %304 : vector<8x128xf32>
    %306 = math.tanh %300 : vector<8x128xf32>
    %307 = vector.extract_strided_slice %305 {offsets = [0, 0], sizes = [8, 32], strides = [1, 1]} : vector<8x128xf32> to vector<8x32xf32>
    %308 = vector.extract_strided_slice %305 {offsets = [0, 32], sizes = [8, 32], strides = [1, 1]} : vector<8x128xf32> to vector<8x32xf32>
    %309 = vector.extract_strided_slice %306 {offsets = [0, 64], sizes = [8, 32], strides = [1, 1]} : vector<8x128xf32> to vector<8x32xf32>
    %310 = vector.extract_strided_slice %305 {offsets = [0, 96], sizes = [8, 32], strides = [1, 1]} : vector<8x128xf32> to vector<8x32xf32>
    %311 = arith.mulf %308, %290 : vector<8x32xf32>
    %312 = arith.mulf %307, %309 : vector<8x32xf32>
    %313 = arith.addf %311, %312 : vector<8x32xf32>
    %314 = math.tanh %313 : vector<8x32xf32>
    %315 = arith.mulf %310, %314 : vector<8x32xf32>
    %316 = arith.index_cast %296 : i32 to index
    %c0_92 = arith.constant 0 : index
    %317 = vector.load %arg15[%316, %c0_92] : memref<64x32xf32, #tpu.memory_space<vmem>>, vector<8x32xf32>
    tpu.vector_store %arg15[%316, %c0_92], %315 {strides = array<i32>} : memref<64x32xf32, #tpu.memory_space<vmem>>, vector<8x32xf32>,
    %c5_i32_93 = arith.constant 5 : i32
    %c8_i32_94 = arith.constant 8 : i32
    %318 = arith.muli %c5_i32_93, %c8_i32_94 : i32
    %319 = tpu.assume_multiple %318, 8 : i32
    %320 = arith.index_cast %319 : i32 to index
    %c0_95 = arith.constant 0 : index
    %321 = vector.load %arg14[%320, %c0_95] : memref<64x128xf32, #tpu.memory_space<vmem>>, vector<8x128xf32>
    %cst_96 = arith.constant dense<0.000000e+00> : vector<8x128xf32>
    %322 = tpu.matmul %315, %201, %cst_96 {dimension_numbers = #tpu.dot_dimension_numbers<[1], [0], [0], [1], [0, 0, 1, 1], [], []>} : vector<8x32xf32>, vector<32x128xf32>, vector<8x128xf32> -> vector<8x128xf32>
    %323 = arith.addf %321, %322 : vector<8x128xf32>
    %324 = arith.negf %323 : vector<8x128xf32>
    %325 = math.exp %324 : vector<8x128xf32>
    %cst_97 = arith.constant 1.000000e+00 : f32
    %326 = vector.broadcast %cst_97 : f32 to vector<8x128xf32>
    %327 = arith.addf %326, %325 : vector<8x128xf32>
    %328 = arith.divf %326, %327 : vector<8x128xf32>
    %329 = math.tanh %323 : vector<8x128xf32>
    %330 = vector.extract_strided_slice %328 {offsets = [0, 0], sizes = [8, 32], strides = [1, 1]} : vector<8x128xf32> to vector<8x32xf32>
    %331 = vector.extract_strided_slice %328 {offsets = [0, 32], sizes = [8, 32], strides = [1, 1]} : vector<8x128xf32> to vector<8x32xf32>
    %332 = vector.extract_strided_slice %329 {offsets = [0, 64], sizes = [8, 32], strides = [1, 1]} : vector<8x128xf32> to vector<8x32xf32>
    %333 = vector.extract_strided_slice %328 {offsets = [0, 96], sizes = [8, 32], strides = [1, 1]} : vector<8x128xf32> to vector<8x32xf32>
    %334 = arith.mulf %331, %313 : vector<8x32xf32>
    %335 = arith.mulf %330, %332 : vector<8x32xf32>
    %336 = arith.addf %334, %335 : vector<8x32xf32>
    %337 = math.tanh %336 : vector<8x32xf32>
    %338 = arith.mulf %333, %337 : vector<8x32xf32>
    %339 = arith.index_cast %319 : i32 to index
    %c0_98 = arith.constant 0 : index
    %340 = vector.load %arg15[%339, %c0_98] : memref<64x32xf32, #tpu.memory_space<vmem>>, vector<8x32xf32>
    tpu.vector_store %arg15[%339, %c0_98], %338 {strides = array<i32>} : memref<64x32xf32, #tpu.memory_space<vmem>>, vector<8x32xf32>,
    %c6_i32_99 = arith.constant 6 : i32
    %c8_i32_100 = arith.constant 8 : i32
    %341 = arith.muli %c6_i32_99, %c8_i32_100 : i32
    %342 = tpu.assume_multiple %341, 8 : i32
    %343 = arith.index_cast %342 : i32 to index
    %c0_101 = arith.constant 0 : index
    %344 = vector.load %arg14[%343, %c0_101] : memref<64x128xf32, #tpu.memory_space<vmem>>, vector<8x128xf32>
    %cst_102 = arith.constant dense<0.000000e+00> : vector<8x128xf32>
    %345 = tpu.matmul %338, %201, %cst_102 {dimension_numbers = #tpu.dot_dimension_numbers<[1], [0], [0], [1], [0, 0, 1, 1], [], []>} : vector<8x32xf32>, vector<32x128xf32>, vector<8x128xf32> -> vector<8x128xf32>
    %346 = arith.addf %344, %345 : vector<8x128xf32>
    %347 = arith.negf %346 : vector<8x128xf32>
    %348 = math.exp %347 : vector<8x128xf32>
    %cst_103 = arith.constant 1.000000e+00 : f32
    %349 = vector.broadcast %cst_103 : f32 to vector<8x128xf32>
    %350 = arith.addf %349, %348 : vector<8x128xf32>
    %351 = arith.divf %349, %350 : vector<8x128xf32>
    %352 = math.tanh %346 : vector<8x128xf32>
    %353 = vector.extract_strided_slice %351 {offsets = [0, 0], sizes = [8, 32], strides = [1, 1]} : vector<8x128xf32> to vector<8x32xf32>
    %354 = vector.extract_strided_slice %351 {offsets = [0, 32], sizes = [8, 32], strides = [1, 1]} : vector<8x128xf32> to vector<8x32xf32>
    %355 = vector.extract_strided_slice %352 {offsets = [0, 64], sizes = [8, 32], strides = [1, 1]} : vector<8x128xf32> to vector<8x32xf32>
    %356 = vector.extract_strided_slice %351 {offsets = [0, 96], sizes = [8, 32], strides = [1, 1]} : vector<8x128xf32> to vector<8x32xf32>
    %357 = arith.mulf %354, %336 : vector<8x32xf32>
    %358 = arith.mulf %353, %355 : vector<8x32xf32>
    %359 = arith.addf %357, %358 : vector<8x32xf32>
    %360 = math.tanh %359 : vector<8x32xf32>
    %361 = arith.mulf %356, %360 : vector<8x32xf32>
    %362 = arith.index_cast %342 : i32 to index
    %c0_104 = arith.constant 0 : index
    %363 = vector.load %arg15[%362, %c0_104] : memref<64x32xf32, #tpu.memory_space<vmem>>, vector<8x32xf32>
    tpu.vector_store %arg15[%362, %c0_104], %361 {strides = array<i32>} : memref<64x32xf32, #tpu.memory_space<vmem>>, vector<8x32xf32>,
    %c7_i32_105 = arith.constant 7 : i32
    %c8_i32_106 = arith.constant 8 : i32
    %364 = arith.muli %c7_i32_105, %c8_i32_106 : i32
    %365 = tpu.assume_multiple %364, 8 : i32
    %366 = arith.index_cast %365 : i32 to index
    %c0_107 = arith.constant 0 : index
    %367 = vector.load %arg14[%366, %c0_107] : memref<64x128xf32, #tpu.memory_space<vmem>>, vector<8x128xf32>
    %cst_108 = arith.constant dense<0.000000e+00> : vector<8x128xf32>
    %368 = tpu.matmul %361, %201, %cst_108 {dimension_numbers = #tpu.dot_dimension_numbers<[1], [0], [0], [1], [0, 0, 1, 1], [], []>} : vector<8x32xf32>, vector<32x128xf32>, vector<8x128xf32> -> vector<8x128xf32>
    %369 = arith.addf %367, %368 : vector<8x128xf32>
    %370 = arith.negf %369 : vector<8x128xf32>
    %371 = math.exp %370 : vector<8x128xf32>
    %cst_109 = arith.constant 1.000000e+00 : f32
    %372 = vector.broadcast %cst_109 : f32 to vector<8x128xf32>
    %373 = arith.addf %372, %371 : vector<8x128xf32>
    %374 = arith.divf %372, %373 : vector<8x128xf32>
    %375 = math.tanh %369 : vector<8x128xf32>
    %376 = vector.extract_strided_slice %374 {offsets = [0, 0], sizes = [8, 32], strides = [1, 1]} : vector<8x128xf32> to vector<8x32xf32>
    %377 = vector.extract_strided_slice %374 {offsets = [0, 32], sizes = [8, 32], strides = [1, 1]} : vector<8x128xf32> to vector<8x32xf32>
    %378 = vector.extract_strided_slice %375 {offsets = [0, 64], sizes = [8, 32], strides = [1, 1]} : vector<8x128xf32> to vector<8x32xf32>
    %379 = vector.extract_strided_slice %374 {offsets = [0, 96], sizes = [8, 32], strides = [1, 1]} : vector<8x128xf32> to vector<8x32xf32>
    %380 = arith.mulf %377, %359 : vector<8x32xf32>
    %381 = arith.mulf %376, %378 : vector<8x32xf32>
    %382 = arith.addf %380, %381 : vector<8x32xf32>
    %383 = math.tanh %382 : vector<8x32xf32>
    %384 = arith.mulf %379, %383 : vector<8x32xf32>
    %385 = arith.index_cast %365 : i32 to index
    %c0_110 = arith.constant 0 : index
    %386 = vector.load %arg15[%385, %c0_110] : memref<64x32xf32, #tpu.memory_space<vmem>>, vector<8x32xf32>
    tpu.vector_store %arg15[%385, %c0_110], %384 {strides = array<i32>} : memref<64x32xf32, #tpu.memory_space<vmem>>, vector<8x32xf32>,
    %c8_i32_111 = arith.constant 8 : i32
    %c0_112 = arith.constant 0 : index
    %c0_113 = arith.constant 0 : index
    %387 = vector.load %arg15[%c0_112, %c0_113] : memref<64x32xf32, #tpu.memory_space<vmem>>, vector<64x32xf32>
    %c0_114 = arith.constant 0 : index
    %c0_115 = arith.constant 0 : index
    %388 = vector.load %arg8[%c0_114, %c0_115] : memref<32x128xf32, #tpu.memory_space<vmem>>, vector<32x128xf32>
    %cst_116 = arith.constant dense<0.000000e+00> : vector<64x128xf32>
    %389 = tpu.matmul %387, %388, %cst_116 {dimension_numbers = #tpu.dot_dimension_numbers<[1], [0], [0], [1], [0, 0, 1, 1], [], []>} : vector<64x32xf32>, vector<32x128xf32>, vector<64x128xf32> -> vector<64x128xf32>
    %c0_117 = arith.constant 0 : index
    %c0_118 = arith.constant 0 : index
    %390 = vector.load %arg10[%c0_117, %c0_118] : memref<1x128xf32, #tpu.memory_space<vmem>>, vector<1x128xf32>
    %391 = vector.broadcast %390 : vector<1x128xf32> to vector<64x128xf32>
    %392 = arith.addf %389, %391 : vector<64x128xf32>
    %c0_119 = arith.constant 0 : index
    %c0_120 = arith.constant 0 : index
    %393 = vector.load %arg14[%c0_119, %c0_120] : memref<64x128xf32, #tpu.memory_space<vmem>>, vector<64x128xf32>
    tpu.vector_store %arg14[%c0_119, %c0_120], %392 {strides = array<i32>} : memref<64x128xf32, #tpu.memory_space<vmem>>, vector<64x128xf32>,
    %c0_121 = arith.constant 0 : index
    %c0_122 = arith.constant 0 : index
    %394 = vector.load %arg9[%c0_121, %c0_122] : memref<32x128xf32, #tpu.memory_space<vmem>>, vector<32x128xf32>
    %cst_123 = arith.constant 0.000000e+00 : f32
    %395 = vector.broadcast %cst_123 : f32 to vector<8x32xf32>
    %c0_i32_124 = arith.constant 0 : i32
    %c8_i32_125 = arith.constant 8 : i32
    %396 = arith.muli %c0_i32_124, %c8_i32_125 : i32
    %397 = tpu.assume_multiple %396, 8 : i32
    %398 = arith.index_cast %397 : i32 to index
    %c0_126 = arith.constant 0 : index
    %399 = vector.load %arg14[%398, %c0_126] : memref<64x128xf32, #tpu.memory_space<vmem>>, vector<8x128xf32>
    %cst_127 = arith.constant dense<0.000000e+00> : vector<8x128xf32>
    %400 = tpu.matmul %395, %394, %cst_127 {dimension_numbers = #tpu.dot_dimension_numbers<[1], [0], [0], [1], [0, 0, 1, 1], [], []>} : vector<8x32xf32>, vector<32x128xf32>, vector<8x128xf32> -> vector<8x128xf32>
    %401 = arith.addf %399, %400 : vector<8x128xf32>
    %402 = arith.negf %401 : vector<8x128xf32>
    %403 = math.exp %402 : vector<8x128xf32>
    %cst_128 = arith.constant 1.000000e+00 : f32
    %404 = vector.broadcast %cst_128 : f32 to vector<8x128xf32>
    %405 = arith.addf %404, %403 : vector<8x128xf32>
    %406 = arith.divf %404, %405 : vector<8x128xf32>
    %407 = math.tanh %401 : vector<8x128xf32>
    %408 = vector.extract_strided_slice %406 {offsets = [0, 0], sizes = [8, 32], strides = [1, 1]} : vector<8x128xf32> to vector<8x32xf32>
    %409 = vector.extract_strided_slice %406 {offsets = [0, 32], sizes = [8, 32], strides = [1, 1]} : vector<8x128xf32> to vector<8x32xf32>
    %410 = vector.extract_strided_slice %407 {offsets = [0, 64], sizes = [8, 32], strides = [1, 1]} : vector<8x128xf32> to vector<8x32xf32>
    %411 = vector.extract_strided_slice %406 {offsets = [0, 96], sizes = [8, 32], strides = [1, 1]} : vector<8x128xf32> to vector<8x32xf32>
    %412 = arith.mulf %409, %395 : vector<8x32xf32>
    %413 = arith.mulf %408, %410 : vector<8x32xf32>
    %414 = arith.addf %412, %413 : vector<8x32xf32>
    %415 = math.tanh %414 : vector<8x32xf32>
    %416 = arith.mulf %411, %415 : vector<8x32xf32>
    %c1_i32_129 = arith.constant 1 : i32
    %c8_i32_130 = arith.constant 8 : i32
    %417 = arith.muli %c1_i32_129, %c8_i32_130 : i32
    %418 = tpu.assume_multiple %417, 8 : i32
    %419 = arith.index_cast %418 : i32 to index
    %c0_131 = arith.constant 0 : index
    %420 = vector.load %arg14[%419, %c0_131] : memref<64x128xf32, #tpu.memory_space<vmem>>, vector<8x128xf32>
    %cst_132 = arith.constant dense<0.000000e+00> : vector<8x128xf32>
    %421 = tpu.matmul %416, %394, %cst_132 {dimension_numbers = #tpu.dot_dimension_numbers<[1], [0], [0], [1], [0, 0, 1, 1], [], []>} : vector<8x32xf32>, vector<32x128xf32>, vector<8x128xf32> -> vector<8x128xf32>
    %422 = arith.addf %420, %421 : vector<8x128xf32>
    %423 = arith.negf %422 : vector<8x128xf32>
    %424 = math.exp %423 : vector<8x128xf32>
    %cst_133 = arith.constant 1.000000e+00 : f32
    %425 = vector.broadcast %cst_133 : f32 to vector<8x128xf32>
    %426 = arith.addf %425, %424 : vector<8x128xf32>
    %427 = arith.divf %425, %426 : vector<8x128xf32>
    %428 = math.tanh %422 : vector<8x128xf32>
    %429 = vector.extract_strided_slice %427 {offsets = [0, 0], sizes = [8, 32], strides = [1, 1]} : vector<8x128xf32> to vector<8x32xf32>
    %430 = vector.extract_strided_slice %427 {offsets = [0, 32], sizes = [8, 32], strides = [1, 1]} : vector<8x128xf32> to vector<8x32xf32>
    %431 = vector.extract_strided_slice %428 {offsets = [0, 64], sizes = [8, 32], strides = [1, 1]} : vector<8x128xf32> to vector<8x32xf32>
    %432 = vector.extract_strided_slice %427 {offsets = [0, 96], sizes = [8, 32], strides = [1, 1]} : vector<8x128xf32> to vector<8x32xf32>
    %433 = arith.mulf %430, %414 : vector<8x32xf32>
    %434 = arith.mulf %429, %431 : vector<8x32xf32>
    %435 = arith.addf %433, %434 : vector<8x32xf32>
    %436 = math.tanh %435 : vector<8x32xf32>
    %437 = arith.mulf %432, %436 : vector<8x32xf32>
    %c2_i32_134 = arith.constant 2 : i32
    %c8_i32_135 = arith.constant 8 : i32
    %438 = arith.muli %c2_i32_134, %c8_i32_135 : i32
    %439 = tpu.assume_multiple %438, 8 : i32
    %440 = arith.index_cast %439 : i32 to index
    %c0_136 = arith.constant 0 : index
    %441 = vector.load %arg14[%440, %c0_136] : memref<64x128xf32, #tpu.memory_space<vmem>>, vector<8x128xf32>
    %cst_137 = arith.constant dense<0.000000e+00> : vector<8x128xf32>
    %442 = tpu.matmul %437, %394, %cst_137 {dimension_numbers = #tpu.dot_dimension_numbers<[1], [0], [0], [1], [0, 0, 1, 1], [], []>} : vector<8x32xf32>, vector<32x128xf32>, vector<8x128xf32> -> vector<8x128xf32>
    %443 = arith.addf %441, %442 : vector<8x128xf32>
    %444 = arith.negf %443 : vector<8x128xf32>
    %445 = math.exp %444 : vector<8x128xf32>
    %cst_138 = arith.constant 1.000000e+00 : f32
    %446 = vector.broadcast %cst_138 : f32 to vector<8x128xf32>
    %447 = arith.addf %446, %445 : vector<8x128xf32>
    %448 = arith.divf %446, %447 : vector<8x128xf32>
    %449 = math.tanh %443 : vector<8x128xf32>
    %450 = vector.extract_strided_slice %448 {offsets = [0, 0], sizes = [8, 32], strides = [1, 1]} : vector<8x128xf32> to vector<8x32xf32>
    %451 = vector.extract_strided_slice %448 {offsets = [0, 32], sizes = [8, 32], strides = [1, 1]} : vector<8x128xf32> to vector<8x32xf32>
    %452 = vector.extract_strided_slice %449 {offsets = [0, 64], sizes = [8, 32], strides = [1, 1]} : vector<8x128xf32> to vector<8x32xf32>
    %453 = vector.extract_strided_slice %448 {offsets = [0, 96], sizes = [8, 32], strides = [1, 1]} : vector<8x128xf32> to vector<8x32xf32>
    %454 = arith.mulf %451, %435 : vector<8x32xf32>
    %455 = arith.mulf %450, %452 : vector<8x32xf32>
    %456 = arith.addf %454, %455 : vector<8x32xf32>
    %457 = math.tanh %456 : vector<8x32xf32>
    %458 = arith.mulf %453, %457 : vector<8x32xf32>
    %c3_i32_139 = arith.constant 3 : i32
    %c8_i32_140 = arith.constant 8 : i32
    %459 = arith.muli %c3_i32_139, %c8_i32_140 : i32
    %460 = tpu.assume_multiple %459, 8 : i32
    %461 = arith.index_cast %460 : i32 to index
    %c0_141 = arith.constant 0 : index
    %462 = vector.load %arg14[%461, %c0_141] : memref<64x128xf32, #tpu.memory_space<vmem>>, vector<8x128xf32>
    %cst_142 = arith.constant dense<0.000000e+00> : vector<8x128xf32>
    %463 = tpu.matmul %458, %394, %cst_142 {dimension_numbers = #tpu.dot_dimension_numbers<[1], [0], [0], [1], [0, 0, 1, 1], [], []>} : vector<8x32xf32>, vector<32x128xf32>, vector<8x128xf32> -> vector<8x128xf32>
    %464 = arith.addf %462, %463 : vector<8x128xf32>
    %465 = arith.negf %464 : vector<8x128xf32>
    %466 = math.exp %465 : vector<8x128xf32>
    %cst_143 = arith.constant 1.000000e+00 : f32
    %467 = vector.broadcast %cst_143 : f32 to vector<8x128xf32>
    %468 = arith.addf %467, %466 : vector<8x128xf32>
    %469 = arith.divf %467, %468 : vector<8x128xf32>
    %470 = math.tanh %464 : vector<8x128xf32>
    %471 = vector.extract_strided_slice %469 {offsets = [0, 0], sizes = [8, 32], strides = [1, 1]} : vector<8x128xf32> to vector<8x32xf32>
    %472 = vector.extract_strided_slice %469 {offsets = [0, 32], sizes = [8, 32], strides = [1, 1]} : vector<8x128xf32> to vector<8x32xf32>
    %473 = vector.extract_strided_slice %470 {offsets = [0, 64], sizes = [8, 32], strides = [1, 1]} : vector<8x128xf32> to vector<8x32xf32>
    %474 = vector.extract_strided_slice %469 {offsets = [0, 96], sizes = [8, 32], strides = [1, 1]} : vector<8x128xf32> to vector<8x32xf32>
    %475 = arith.mulf %472, %456 : vector<8x32xf32>
    %476 = arith.mulf %471, %473 : vector<8x32xf32>
    %477 = arith.addf %475, %476 : vector<8x32xf32>
    %478 = math.tanh %477 : vector<8x32xf32>
    %479 = arith.mulf %474, %478 : vector<8x32xf32>
    %c4_i32_144 = arith.constant 4 : i32
    %c8_i32_145 = arith.constant 8 : i32
    %480 = arith.muli %c4_i32_144, %c8_i32_145 : i32
    %481 = tpu.assume_multiple %480, 8 : i32
    %482 = arith.index_cast %481 : i32 to index
    %c0_146 = arith.constant 0 : index
    %483 = vector.load %arg14[%482, %c0_146] : memref<64x128xf32, #tpu.memory_space<vmem>>, vector<8x128xf32>
    %cst_147 = arith.constant dense<0.000000e+00> : vector<8x128xf32>
    %484 = tpu.matmul %479, %394, %cst_147 {dimension_numbers = #tpu.dot_dimension_numbers<[1], [0], [0], [1], [0, 0, 1, 1], [], []>} : vector<8x32xf32>, vector<32x128xf32>, vector<8x128xf32> -> vector<8x128xf32>
    %485 = arith.addf %483, %484 : vector<8x128xf32>
    %486 = arith.negf %485 : vector<8x128xf32>
    %487 = math.exp %486 : vector<8x128xf32>
    %cst_148 = arith.constant 1.000000e+00 : f32
    %488 = vector.broadcast %cst_148 : f32 to vector<8x128xf32>
    %489 = arith.addf %488, %487 : vector<8x128xf32>
    %490 = arith.divf %488, %489 : vector<8x128xf32>
    %491 = math.tanh %485 : vector<8x128xf32>
    %492 = vector.extract_strided_slice %490 {offsets = [0, 0], sizes = [8, 32], strides = [1, 1]} : vector<8x128xf32> to vector<8x32xf32>
    %493 = vector.extract_strided_slice %490 {offsets = [0, 32], sizes = [8, 32], strides = [1, 1]} : vector<8x128xf32> to vector<8x32xf32>
    %494 = vector.extract_strided_slice %491 {offsets = [0, 64], sizes = [8, 32], strides = [1, 1]} : vector<8x128xf32> to vector<8x32xf32>
    %495 = vector.extract_strided_slice %490 {offsets = [0, 96], sizes = [8, 32], strides = [1, 1]} : vector<8x128xf32> to vector<8x32xf32>
    %496 = arith.mulf %493, %477 : vector<8x32xf32>
    %497 = arith.mulf %492, %494 : vector<8x32xf32>
    %498 = arith.addf %496, %497 : vector<8x32xf32>
    %499 = math.tanh %498 : vector<8x32xf32>
    %500 = arith.mulf %495, %499 : vector<8x32xf32>
    %c5_i32_149 = arith.constant 5 : i32
    %c8_i32_150 = arith.constant 8 : i32
    %501 = arith.muli %c5_i32_149, %c8_i32_150 : i32
    %502 = tpu.assume_multiple %501, 8 : i32
    %503 = arith.index_cast %502 : i32 to index
    %c0_151 = arith.constant 0 : index
    %504 = vector.load %arg14[%503, %c0_151] : memref<64x128xf32, #tpu.memory_space<vmem>>, vector<8x128xf32>
    %cst_152 = arith.constant dense<0.000000e+00> : vector<8x128xf32>
    %505 = tpu.matmul %500, %394, %cst_152 {dimension_numbers = #tpu.dot_dimension_numbers<[1], [0], [0], [1], [0, 0, 1, 1], [], []>} : vector<8x32xf32>, vector<32x128xf32>, vector<8x128xf32> -> vector<8x128xf32>
    %506 = arith.addf %504, %505 : vector<8x128xf32>
    %507 = arith.negf %506 : vector<8x128xf32>
    %508 = math.exp %507 : vector<8x128xf32>
    %cst_153 = arith.constant 1.000000e+00 : f32
    %509 = vector.broadcast %cst_153 : f32 to vector<8x128xf32>
    %510 = arith.addf %509, %508 : vector<8x128xf32>
    %511 = arith.divf %509, %510 : vector<8x128xf32>
    %512 = math.tanh %506 : vector<8x128xf32>
    %513 = vector.extract_strided_slice %511 {offsets = [0, 0], sizes = [8, 32], strides = [1, 1]} : vector<8x128xf32> to vector<8x32xf32>
    %514 = vector.extract_strided_slice %511 {offsets = [0, 32], sizes = [8, 32], strides = [1, 1]} : vector<8x128xf32> to vector<8x32xf32>
    %515 = vector.extract_strided_slice %512 {offsets = [0, 64], sizes = [8, 32], strides = [1, 1]} : vector<8x128xf32> to vector<8x32xf32>
    %516 = vector.extract_strided_slice %511 {offsets = [0, 96], sizes = [8, 32], strides = [1, 1]} : vector<8x128xf32> to vector<8x32xf32>
    %517 = arith.mulf %514, %498 : vector<8x32xf32>
    %518 = arith.mulf %513, %515 : vector<8x32xf32>
    %519 = arith.addf %517, %518 : vector<8x32xf32>
    %520 = math.tanh %519 : vector<8x32xf32>
    %521 = arith.mulf %516, %520 : vector<8x32xf32>
    %c6_i32_154 = arith.constant 6 : i32
    %c8_i32_155 = arith.constant 8 : i32
    %522 = arith.muli %c6_i32_154, %c8_i32_155 : i32
    %523 = tpu.assume_multiple %522, 8 : i32
    %524 = arith.index_cast %523 : i32 to index
    %c0_156 = arith.constant 0 : index
    %525 = vector.load %arg14[%524, %c0_156] : memref<64x128xf32, #tpu.memory_space<vmem>>, vector<8x128xf32>
    %cst_157 = arith.constant dense<0.000000e+00> : vector<8x128xf32>
    %526 = tpu.matmul %521, %394, %cst_157 {dimension_numbers = #tpu.dot_dimension_numbers<[1], [0], [0], [1], [0, 0, 1, 1], [], []>} : vector<8x32xf32>, vector<32x128xf32>, vector<8x128xf32> -> vector<8x128xf32>
    %527 = arith.addf %525, %526 : vector<8x128xf32>
    %528 = arith.negf %527 : vector<8x128xf32>
    %529 = math.exp %528 : vector<8x128xf32>
    %cst_158 = arith.constant 1.000000e+00 : f32
    %530 = vector.broadcast %cst_158 : f32 to vector<8x128xf32>
    %531 = arith.addf %530, %529 : vector<8x128xf32>
    %532 = arith.divf %530, %531 : vector<8x128xf32>
    %533 = math.tanh %527 : vector<8x128xf32>
    %534 = vector.extract_strided_slice %532 {offsets = [0, 0], sizes = [8, 32], strides = [1, 1]} : vector<8x128xf32> to vector<8x32xf32>
    %535 = vector.extract_strided_slice %532 {offsets = [0, 32], sizes = [8, 32], strides = [1, 1]} : vector<8x128xf32> to vector<8x32xf32>
    %536 = vector.extract_strided_slice %533 {offsets = [0, 64], sizes = [8, 32], strides = [1, 1]} : vector<8x128xf32> to vector<8x32xf32>
    %537 = vector.extract_strided_slice %532 {offsets = [0, 96], sizes = [8, 32], strides = [1, 1]} : vector<8x128xf32> to vector<8x32xf32>
    %538 = arith.mulf %535, %519 : vector<8x32xf32>
    %539 = arith.mulf %534, %536 : vector<8x32xf32>
    %540 = arith.addf %538, %539 : vector<8x32xf32>
    %541 = math.tanh %540 : vector<8x32xf32>
    %542 = arith.mulf %537, %541 : vector<8x32xf32>
    %c7_i32_159 = arith.constant 7 : i32
    %c8_i32_160 = arith.constant 8 : i32
    %543 = arith.muli %c7_i32_159, %c8_i32_160 : i32
    %544 = tpu.assume_multiple %543, 8 : i32
    %545 = arith.index_cast %544 : i32 to index
    %c0_161 = arith.constant 0 : index
    %546 = vector.load %arg14[%545, %c0_161] : memref<64x128xf32, #tpu.memory_space<vmem>>, vector<8x128xf32>
    %cst_162 = arith.constant dense<0.000000e+00> : vector<8x128xf32>
    %547 = tpu.matmul %542, %394, %cst_162 {dimension_numbers = #tpu.dot_dimension_numbers<[1], [0], [0], [1], [0, 0, 1, 1], [], []>} : vector<8x32xf32>, vector<32x128xf32>, vector<8x128xf32> -> vector<8x128xf32>
    %548 = arith.addf %546, %547 : vector<8x128xf32>
    %549 = arith.negf %548 : vector<8x128xf32>
    %550 = math.exp %549 : vector<8x128xf32>
    %cst_163 = arith.constant 1.000000e+00 : f32
    %551 = vector.broadcast %cst_163 : f32 to vector<8x128xf32>
    %552 = arith.addf %551, %550 : vector<8x128xf32>
    %553 = arith.divf %551, %552 : vector<8x128xf32>
    %554 = math.tanh %548 : vector<8x128xf32>
    %555 = vector.extract_strided_slice %553 {offsets = [0, 0], sizes = [8, 32], strides = [1, 1]} : vector<8x128xf32> to vector<8x32xf32>
    %556 = vector.extract_strided_slice %553 {offsets = [0, 32], sizes = [8, 32], strides = [1, 1]} : vector<8x128xf32> to vector<8x32xf32>
    %557 = vector.extract_strided_slice %554 {offsets = [0, 64], sizes = [8, 32], strides = [1, 1]} : vector<8x128xf32> to vector<8x32xf32>
    %558 = vector.extract_strided_slice %553 {offsets = [0, 96], sizes = [8, 32], strides = [1, 1]} : vector<8x128xf32> to vector<8x32xf32>
    %559 = arith.mulf %556, %540 : vector<8x32xf32>
    %560 = arith.mulf %555, %557 : vector<8x32xf32>
    %561 = arith.addf %559, %560 : vector<8x32xf32>
    %562 = math.tanh %561 : vector<8x32xf32>
    %563 = arith.mulf %558, %562 : vector<8x32xf32>
    %c8_i32_164 = arith.constant 8 : i32
    %c0_165 = arith.constant 0 : index
    %c0_166 = arith.constant 0 : index
    %564 = vector.load %arg11[%c0_165, %c0_166] : memref<1x32xf32, #tpu.memory_space<vmem>>, vector<1x32xf32>
    %565 = vector.broadcast %564 : vector<1x32xf32> to vector<8x32xf32>
    %566 = arith.mulf %563, %565 : vector<8x32xf32>
    %cst_167 = arith.constant dense<0.000000e+00> : vector<8xf32>
    %567 = vector.multi_reduction <add>, %566, %cst_167 [1] : vector<8x32xf32> to vector<8xf32>
    %568 = vector.shape_cast %567 : vector<8xf32> to vector<8x1xf32>
    %c0_168 = arith.constant 0 : index
    %c0_169 = arith.constant 0 : index
    %569 = vector.load %arg12[%c0_168, %c0_169] : memref<1x1xf32, #tpu.memory_space<vmem>>, vector<1x1xf32>
    %570 = vector.broadcast %569 : vector<1x1xf32> to vector<8x1xf32>
    %571 = arith.addf %568, %570 : vector<8x1xf32>
    %c0_170 = arith.constant 0 : index
    %c0_171 = arith.constant 0 : index
    %572 = vector.load %arg13[%c0_170, %c0_171] : memref<8x1xf32, #tpu.memory_space<vmem>>, vector<8x1xf32>
    tpu.vector_store %arg13[%c0_170, %c0_171], %571 {strides = array<i32>} : memref<8x1xf32, #tpu.memory_space<vmem>>, vector<8x1xf32>,
    return
  }
  func.func @transform_0(%arg0: i32) -> (i32, i32, i32) {
    %c0_i32 = arith.constant 0 : i32
    %c0_i32_0 = arith.constant 0 : i32
    %c0_i32_1 = arith.constant 0 : i32
    return %arg0, %c0_i32, %c0_i32_0 : i32, i32, i32
  }
  func.func @transform_1(%arg0: i32) -> (i32, i32) {
    %c0_i32 = arith.constant 0 : i32
    %c0_i32_0 = arith.constant 0 : i32
    %c0_i32_1 = arith.constant 0 : i32
    return %c0_i32, %c0_i32_0 : i32, i32
  }
  func.func @transform_2(%arg0: i32) -> (i32, i32) {
    %c0_i32 = arith.constant 0 : i32
    %c0_i32_0 = arith.constant 0 : i32
    %c0_i32_1 = arith.constant 0 : i32
    return %c0_i32, %c0_i32_0 : i32, i32
  }
  func.func @transform_3(%arg0: i32) -> (i32, i32) {
    %c0_i32 = arith.constant 0 : i32
    %c0_i32_0 = arith.constant 0 : i32
    %c0_i32_1 = arith.constant 0 : i32
    return %c0_i32, %c0_i32_0 : i32, i32
  }
  func.func @transform_4(%arg0: i32) -> (i32, i32) {
    %c0_i32 = arith.constant 0 : i32
    %c0_i32_0 = arith.constant 0 : i32
    %c0_i32_1 = arith.constant 0 : i32
    return %c0_i32, %c0_i32_0 : i32, i32
  }
  func.func @transform_5(%arg0: i32) -> (i32, i32) {
    %c0_i32 = arith.constant 0 : i32
    %c0_i32_0 = arith.constant 0 : i32
    %c0_i32_1 = arith.constant 0 : i32
    return %c0_i32, %c0_i32_0 : i32, i32
  }
  func.func @transform_6(%arg0: i32) -> (i32, i32) {
    %c0_i32 = arith.constant 0 : i32
    %c0_i32_0 = arith.constant 0 : i32
    %c0_i32_1 = arith.constant 0 : i32
    return %c0_i32, %c0_i32_0 : i32, i32
  }
  func.func @transform_7(%arg0: i32) -> (i32, i32) {
    %c0_i32 = arith.constant 0 : i32
    %c0_i32_0 = arith.constant 0 : i32
    %c0_i32_1 = arith.constant 0 : i32
    return %c0_i32, %c0_i32_0 : i32, i32
  }
  func.func @transform_8(%arg0: i32) -> (i32, i32) {
    %c0_i32 = arith.constant 0 : i32
    %c0_i32_0 = arith.constant 0 : i32
    %c0_i32_1 = arith.constant 0 : i32
    return %c0_i32, %c0_i32_0 : i32, i32
  }
  func.func @transform_9(%arg0: i32) -> (i32, i32) {
    %c0_i32 = arith.constant 0 : i32
    %c0_i32_0 = arith.constant 0 : i32
    %c0_i32_1 = arith.constant 0 : i32
    return %c0_i32, %c0_i32_0 : i32, i32
  }
  func.func @transform_10(%arg0: i32) -> (i32, i32) {
    %c0_i32 = arith.constant 0 : i32
    %c0_i32_0 = arith.constant 0 : i32
    %c0_i32_1 = arith.constant 0 : i32
    return %c0_i32, %c0_i32_0 : i32, i32
  }
  func.func @transform_11(%arg0: i32) -> (i32, i32) {
    %c0_i32 = arith.constant 0 : i32
    %c0_i32_0 = arith.constant 0 : i32
    %c0_i32_1 = arith.constant 0 : i32
    return %c0_i32, %c0_i32_0 : i32, i32
  }
  func.func @transform_12(%arg0: i32) -> (i32, i32) {
    %c0_i32 = arith.constant 0 : i32
    %c0_i32_0 = arith.constant 0 : i32
    return %arg0, %c0_i32 : i32, i32
  }
}

</mosaic_0001>

<bundles_post_ra>
// kernel: my_model_forward.1
= control target key start
LH: loop header
LB: loop body
LE: loop exit
PB: predicated region body
PF: predicated region fallthrough
CT: control target
= control target key end

     0   :  { %s4591_s0 = inlined_call_operand.vmem [shape: f32[1,64,8], index: 0, kind: input, shape index: {}]   ;;  %s4592_s1 = inlined_call_operand.vmem [shape: f32[8,128], index: 1, kind: input, shape index: {}]   ;;  %s4593_s2 = inlined_call_operand.vmem [shape: f32[32,128], index: 2, kind: input, shape index: {}]   ;;  %s4594_s3 = inlined_call_operand.vmem [shape: f32[1,128], index: 3, kind: input, shape index: {}]   ;;  %s4595_s4 = inlined_call_operand.vmem [shape: f32[32,128], index: 4, kind: input, shape index: {}]   ;;  %s4596_s5 = inlined_call_operand.vmem [shape: f32[32,128], index: 5, kind: input, shape index: {}]   ;;  %s4597_s6 = inlined_call_operand.vmem [shape: f32[1,128], index: 6, kind: input, shape index: {}]   ;;  %s4598_s7 = inlined_call_operand.hbm [shape: f32[32,128], index: 7, kind: input, shape index: {}]   ;;  %s4599_s8 = inlined_call_operand.hbm [shape: f32[32,128], index: 8, kind: input, shape index: {}]   ;;  %s4600_s9 = inlined_call_operand.vmem [shape: f32[1,128], index: 9, kind: input, shape index: {}]   ;;  %s4601_s10 = inlined_call_operand.vmem [shape: f32[1,32], index: 10, kind: input, shape index: {}]   ;;  %s4602_s11 = inlined_call_operand.<no memory space> [shape: f32[1,1], index: 11, kind: input, shape index: {}]   ;;  %s4603_s12 = inlined_call_operand.vmem [shape: f32[8,1], index: 12, kind: output, shape index: {}]  }
   0x1   :  { %v17_v0 = vstv %s4602_s11 }
   0x2   :  { %18 = vst [vmem:[#allocation4] sm:$0x1] %v17_v0 }
   0x3   :  { %19 = vsyncpa [#allocation6], 0 }
   0x4   :  { %20 = vsyncpa [#allocation8], 0  ;;  %s4002_s23 = smov [#allocation5]   ;;  %s3954_s27 = scalar_lea.hbm %s4598_s7, 512 }
   0x5   :  { %s40_s24 = sshll.u32 %s4002_s23, 4  ;;  %p3955_p0 = scmp.ne.s32.totalorder %s4598_s7, %s3954_s27  ;;  %s41_s24 = int_to_ptr.vmem [resolvable:$true] %s40_s24 }
   0x6   :  { %p3958_p1 = scmp.lt.u32.totalorder %s3954_s27, %s4598_s7 }
   0x8   :  { %p3960_p2 = pnand %p3958_p1, %p3955_p0 }
   0xa   :  { %3963 = shalt.err (!%p3960_p2)
}
   0xb   :  { %s3964_s11 = scalar_lea.vmem %s41_s24, 512  ;;  %p3969_p4 = scmp.lt.s32.totalorder %s41_s24, %s41_s24 }
   0xc   :  { %p3965_p3 = scmp.ne.s32.totalorder %s41_s24, %s3964_s11  ;;  %p3970_p5 = scmp.lt.s32.totalorder %s3964_s11, %s3964_s11 }
   0xe   :  { %p3971_p6 = por %p3970_p5, %p3969_p4 }
  0x10   :  { %p3972_p7 = pnand %p3971_p6, %p3965_p3 }
  0x12   :  { %3975 = shalt.err (!%p3972_p7)
}
  0x13   :  { %s4003_s14 = smov 128   ;;  %s4004_s15 = smov 8  }
  0x14   :  { %46 = dma.hbm_to_vmem [thread:$0]  %s4598_s7, 512, %s41_s24, [#allocation6], %s4003_s14, %s4003_s14, %s4004_s15  }
  0x15   :  { %s4005_s18 = smov [#allocation7]   ;;  %s3976_s22 = scalar_lea.hbm %s4599_s8, 512 }
  0x16   :  { %s52_s19 = sshll.u32 %s4005_s18, 4  ;;  %p3977_p8 = scmp.ne.s32.totalorder %s4599_s8, %s3976_s22  ;;  %s53_s19 = int_to_ptr.vmem [resolvable:$true] %s52_s19 }
  0x17   :  { %p3980_p9 = scmp.lt.u32.totalorder %s3976_s22, %s4599_s8 }
  0x19   :  { %p3982_p10 = pnand %p3980_p9, %p3977_p8 }
  0x1b   :  { %3985 = shalt.err (!%p3982_p10)
}
  0x1c   :  { %s3986_s28 = scalar_lea.vmem %s53_s19, 512  ;;  %p3991_p12 = scmp.lt.s32.totalorder %s53_s19, %s53_s19 }
  0x1d   :  { %p3987_p11 = scmp.ne.s32.totalorder %s53_s19, %s3986_s28  ;;  %p3992_p13 = scmp.lt.s32.totalorder %s3986_s28, %s3986_s28 }
  0x1f   :  { %p3993_p0 = por %p3992_p13, %p3991_p12 }
  0x21   :  { %p3994_p1 = pnand %p3993_p0, %p3987_p11 }
  0x23   :  { %3997 = shalt.err (!%p3994_p1)
}
  0x24   :  { %58 = dma.hbm_to_vmem [thread:$0]  %s4599_s8, 512, %s53_s19, [#allocation8], %s4003_s14, %s4003_s14, %s4004_s15  }
  0x25   :  { %3998 = dma.done.wait [#allocation6], 512  }
  0x26   :  { %3999 = vsyncadd [#allocation6], 4294966784 }
  0x27   :  { %4000 = dma.done.wait [#allocation8], 512  }
  0x28   :  { %4001 = vsyncadd [#allocation8], 4294966784  ;;  %v4006_v1 = vmov 0.0|0.0   ;;  %vm4007_vm0 = vmmov 0   ;;  %v4008_v2 = vmov 0.0   ;;  %vm87_vm1 = vcmask 64512  }
  0x29   :  { %3592 = vmatprep.subr.bf16.mxu1 %v4006_v1  ;;  %3296 = vmatprep.mubr.msk.f32.mxu1 %vm4007_vm0, %v4008_v2  ;;  %v225_v3 = vld [vmem:[%s4593_s2] sm:$0xff]  ;;  %v226_v4 = vld [vmem:[%s4593_s2 + $0x8] sm:$0xff]  ;;  %v227_v9 = vld [vmem:[%s4593_s2 + $0x10] sm:$0xff]  ;;  %s4009_s23 = smov 64   ;;  %vm230_vm2 = vcmask 261120   ;;  %s4011_s30 = smov 96  }
  0x2a   :  { %v79_v5 = vld [vmem:[%s4592_s1] sm:$0xff]  ;;  %v4116_v6 = vpack.c.bf16 %v226_v4, %v225_v3  ;;  %v72_v8 = vld [vmem:[%s4591_s0 + $0x8] sm:$0xff]  ;;  %v228_v10 = vld [vmem:[%s4593_s2 + $0x18] sm:$0xff]  ;;  %vm3039_vm3 = vcmask 7168  }
  0x2b   :  { %3274 = vmatprep.subr.mxu0 %v79_v5  ;;  %v71_v7 = vld [vmem:[%s4591_s0] sm:$0xff]  ;;  %v4133_v11 = vpack.c.bf16 %v228_v10, %v227_v9  ;;  %v73_v47 = vld [vmem:[%s4591_s0 + $0x10] sm:$0xff]  ;;  %v74_v48 = vld [vmem:[%s4591_s0 + $0x18] sm:$0xff] }
  0x2c   :  { %3275 = vmatpush3.msra.mxu0 %v79_v5  ;;  %3276 = vmatprep.mubr.msk.f32.mxu0 %vm87_vm1, %v71_v7  ;;  %v4153_v13 = vld [vmem:[%s4594_s3] ss:$0 sm:$0xff]  ;;  %s4010_s3 = smov 32   ;;  %v76_v50 = vld [vmem:[%s4591_s0 + $0x28] sm:$0xff]  ;;  %v77_v51 = vld [vmem:[%s4591_s0 + $0x30] sm:$0xff] }
  0x2d   :  { %3594 = vmatpush3.bf16.msra.mxu1 %v4116_v6  ;;  %3277 = vmatmul.mubr.msk.f32.vlgmr.msra.gmra.mrb[0].mxu0 %vm87_vm1, %v72_v8  ;;  %v75_v49 = vld [vmem:[%s4591_s0 + $0x20] sm:$0xff]  ;;  %v78_v52 = vld [vmem:[%s4591_s0 + $0x38] sm:$0xff] }
  0x2e   :  { %3595 = vmatprep.subr.bf16.mxu1 %v4006_v1  ;;  %3604 = vmatprep.subr.bf16.mxu0 %v4006_v1 }
  0x2f   :  { %3606 = vmatpush3.bf16.msra.mxu0 %v4116_v6  ;;  %3279 = vmatprep.mubr.msk.f32.mxu0 %vm87_vm1, %v73_v47 }
  0x30   :  { %3607 = vmatprep.subr.bf16.mxu0 %v4006_v1 }
  0x31   :  { %3597 = vmatpush3.bf16.msra.mxu1 %v4133_v11  ;;  %3280 = vmatmul.mubr.msk.f32.gmra.mrb[2].mxu0 %vm87_vm1, %v74_v48 }
  0x32   :  { %3598 = vmatprep.subr.bf16.mxu1 %v4006_v1  ;;  %3282 = vmatprep.mubr.msk.f32.mxu0 %vm87_vm1, %v75_v49 }
  0x33   :  { %3609 = vmatpush3.bf16.msra.mxu0 %v4133_v11 }
  0x34   :  { %3297 = vmatmul.mubr.f32.vlgmr.msra.gmra.mrb[0].mxu1 %v4008_v2  ;;  %3616 = vmatprep.subr.bf16.mxu0 %v4006_v1 }
  0x35   :  { %3600 = vmatpush3.bf16.msra.mxu1 %v4116_v6  ;;  %3307 = vmatprep.mubr.msk.f32.mxu1 %vm4007_vm0, %v4008_v2 }
  0x36   :  { %3601 = vmatprep.subr.bf16.mxu1 %v4006_v1  ;;  %3283 = vmatmul.mubr.msk.f32.gmra.mrb[4].mxu0 %vm87_vm1, %v76_v50 }
  0x37   :  { %3285 = vmatprep.mubr.msk.f32.mxu0 %vm87_vm1, %v77_v51 }
  0x39   :  { %3603 = vmatpush3.bf16.msra.mxu1 %v4133_v11 }
  0x3a   :  { %3610 = vmatprep.subr.bf16.mxu1 %v4006_v1  ;;  %3286 = vmatmul.mubr.msk.f32.gmra.mrb[6].mxu0 %vm87_vm1, %v78_v52 }
  0x3b   :  { %3318 = vmatprep.mubr.msk.f32.mxu0 %vm4007_vm0, %v4008_v2 }
 0x100   :  { %v3278_v12 = vpop.f32.mrb[0].mxu0 }
 0x101   :  { %v178_v14 = vpop.f32.mrb[1].mxu0  ;;  %v184_v33 = vadd.f32 %v3278_v12, %v4153_v13 }
 0x102   :  { %v179_v15 = vadd.f32 %v4153_v13, %v178_v14 }
 0x104   :  { %v3281_v56 = vpop.f32.mrb[2].mxu0 }
 0x105   :  { %v188_v57 = vpop.f32.mrb[3].mxu0 }
 0x106   :  { %v189_v63 = vadd.f32 %v4153_v13, %v188_v57 }
 0x107   :  { %v300_v16 = vpop.f32.mrb[0].mxu1 }
 0x108   :  { %v304_v17 = vadd.f32 %v300_v16, %v179_v15  ;;  %v3298_v18 = vpop.f32.mrb[1].mxu1 }
 0x109   :  { %v4199_v58 = vpop.f32.mrb[4].mxu0 }
 0x10a   :  { %3762 = vtanh.f32 %v304_v17  ;;  %v3056_v20 = vmul.f32 -1.442695, %v304_v17  ;;  %v4201_v59 = vpop.f32.mrb[5].mxu0 }
 0x10c   :  { %3764 = vpow2.f32 %v3056_v20 }
 0x10d   :  { %v4203_v60 = vpop.f32.mrb[6].mxu0 }
 0x10e   :  { %v4205_v61 = vpop.f32.mrb[7].mxu0 }
 0x114   :  { %v3763_v19 = vpop.eup %3762 }
 0x115   :  { %314 = vrot.lane.b32.xlu0 %v3763_v19, %s4009_s23 }
 0x116   :  { %v3765_v21 = vpop.eup %3764 }
 0x117   :  { %v308_v22 = vadd.f32 1.0, %v3765_v21 }
 0x119   :  { %3766 = vrcp.f32 %v308_v22  ;;  %v194_v22 = vadd.f32 %v3281_v56, %v4153_v13 }
 0x123   :  { %v3767_v23 = vpop.eup %3766 }
 0x124   :  { %v312_v26 = vmul.f32 0.0, %v3767_v23 }
 0x187   :  { %v315_v24 = vpop.permute.xlu0 %314 }
 0x188   :  { %v317_v25 = vmul.f32 %v3767_v23, %v315_v24 }
 0x18a   :  { %319 = vrot.lane.b32.xlu0 %v317_v25, %s4010_s3 }
 0x1fc   :  { %v320_v27 = vpop.permute.xlu0 %319 }
 0x1fd   :  { %v322_v28 = vadd.f32 %v320_v27, %v312_v26 }
 0x1ff   :  { %3768 = vtanh.f32 %v322_v28 }
 0x209   :  { %v3769_v29 = vpop.eup %3768 }
 0x20a   :  { %325 = vrot.lane.b32.xlu1 %v3769_v29, %s4009_s23 }
 0x27c   :  { %v326_v30 = vpop.permute.xlu1 %325 }
 0x27d   :  { %v328_v31 = vmul.f32 %v3767_v23, %v326_v30 }
 0x27f   :  { %330 = vrot.lane.b32.xlu1 %v328_v31, %s4010_s3 }
 0x2f1   :  { %v331_v32 = vpop.permute.xlu1 %330 }
 0x2f2   :  { %333 = vst.msk [vmem:[#allocation3] sm:$0xff] %vm230_vm2, %v331_v32  ;;  %3308 = vmatmul.mubr.msk.f32.vlgmr.msra.gmra.mrb[2].mxu1 %vm230_vm2, %v331_v32 }
 0x2f3   :  { %3612 = vmatpush3.bf16.msra.mxu1 %v4116_v6  ;;  %3329 = vmatprep.mubr.msk.f32.mxu1 %vm4007_vm0, %v4008_v2 }
 0x2f4   :  { %3613 = vmatprep.subr.bf16.mxu1 %v4006_v1 }
 0x2f7   :  { %3615 = vmatpush3.bf16.msra.mxu1 %v4133_v11 }
 0x2f8   :  { %3622 = vmatprep.subr.bf16.mxu1 %v4006_v1 }
 0x3c5   :  { %v404_v34 = vpop.f32.mrb[2].mxu1 }
 0x3c6   :  { %v408_v35 = vadd.f32 %v404_v34, %v184_v33  ;;  %v3309_v36 = vpop.f32.mrb[3].mxu1 }
 0x3c8   :  { %3770 = vtanh.f32 %v408_v35  ;;  %v3058_v38 = vmul.f32 -1.442695, %v408_v35 }
 0x3ca   :  { %3772 = vpow2.f32 %v3058_v38 }
 0x3d2   :  { %v3771_v37 = vpop.eup %3770 }
 0x3d3   :  { %418 = vrot.lane.b32.xlu0 %v3771_v37, %s4009_s23 }
 0x3d4   :  { %v3773_v39 = vpop.eup %3772 }
 0x3d5   :  { %v412_v40 = vadd.f32 1.0, %v3773_v39 }
 0x3d7   :  { %3774 = vrcp.f32 %v412_v40  ;;  %v199_v40 = vadd.f32 %v4153_v13, %v4201_v59  ;;  %v204_v59 = vadd.f32 %v4199_v58, %v4153_v13 }
 0x3e1   :  { %v3775_v41 = vpop.eup %3774 }
 0x3e2   :  { %v416_v44 = vmul.f32 %v3775_v41, %v322_v28 }
 0x445   :  { %v419_v42 = vpop.permute.xlu0 %418 }
 0x446   :  { %v421_v43 = vmul.f32 %v3775_v41, %v419_v42 }
 0x448   :  { %423 = vrot.lane.b32.xlu1 %v421_v43, %s4010_s3 }
 0x4ba   :  { %v424_v45 = vpop.permute.xlu1 %423 }
 0x4bb   :  { %v426_v46 = vadd.f32 %v424_v45, %v416_v44 }
 0x4bd   :  { %3776 = vtanh.f32 %v426_v46 }
 0x4c7   :  { %v3777_v53 = vpop.eup %3776 }
 0x4c8   :  { %429 = vrot.lane.b32.xlu0 %v3777_v53, %s4009_s23 }
 0x53a   :  { %v430_v54 = vpop.permute.xlu0 %429 }
 0x53b   :  { %v432_v55 = vmul.f32 %v3775_v41, %v430_v54 }
 0x53d   :  { %434 = vrot.lane.b32.xlu1 %v432_v55, %s4010_s3 }
 0x5af   :  { %v435_v62 = vpop.permute.xlu1 %434 }
 0x5b0   :  { %438 = vst.msk [vmem:[#allocation3 + $0x8] sm:$0xff] %vm230_vm2, %v435_v62  ;;  %3319 = vmatmul.mubr.msk.f32.vlgmr.msra.gmra.mrb[8].mxu0 %vm230_vm2, %v435_v62 }
 0x5b1   :  { %3618 = vmatpush3.bf16.msra.mxu0 %v4116_v6  ;;  %3340 = vmatprep.mubr.msk.f32.mxu0 %vm4007_vm0, %v4008_v2 }
 0x5b2   :  { %3619 = vmatprep.subr.bf16.mxu0 %v4006_v1 }
 0x5b5   :  { %3621 = vmatpush3.bf16.msra.mxu0 %v4133_v11 }
 0x5b6   :  { %3628 = vmatprep.subr.bf16.mxu0 %v4006_v1 }
 0x683   :  { %v509_v0 = vpop.f32.mrb[8].mxu0 }
 0x684   :  { %v513_v3 = vadd.f32 %v509_v0, %v189_v63  ;;  %v3320_v4 = vpop.f32.mrb[9].mxu0 }
 0x686   :  { %3778 = vtanh.f32 %v513_v3  ;;  %v3060_v7 = vmul.f32 -1.442695, %v513_v3 }
 0x688   :  { %3780 = vpow2.f32 %v3060_v7 }
 0x690   :  { %v3779_v5 = vpop.eup %3778 }
 0x691   :  { %523 = vrot.lane.b32.xlu0 %v3779_v5, %s4009_s23 }
 0x692   :  { %v3781_v8 = vpop.eup %3780 }
 0x693   :  { %v517_v9 = vadd.f32 1.0, %v3781_v8 }
 0x695   :  { %3782 = vrcp.f32 %v517_v9 }
 0x69f   :  { %v3783_v10 = vpop.eup %3782 }
 0x6a0   :  { %v521_v15 = vmul.f32 %v3783_v10, %v426_v46 }
 0x703   :  { %v524_v12 = vpop.permute.xlu0 %523 }
 0x704   :  { %v526_v14 = vmul.f32 %v3783_v10, %v524_v12  ;;  %v1077_v12 = vld [vmem:[%s4595_s4] sm:$0xff] }
 0x706   :  { %528 = vrot.lane.b32.xlu1 %v526_v14, %s4010_s3  ;;  %v1078_v14 = vld [vmem:[%s4595_s4 + $0x8] sm:$0xff] }
 0x778   :  { %v529_v16 = vpop.permute.xlu1 %528 }
 0x779   :  { %v531_v17 = vadd.f32 %v529_v16, %v521_v15  ;;  %v3640_v15 = vpack.c.bf16 %v1078_v14, %v1077_v12 }
 0x77b   :  { %3784 = vtanh.f32 %v531_v17 }
 0x785   :  { %v3785_v18 = vpop.eup %3784 }
 0x786   :  { %534 = vrot.lane.b32.xlu0 %v3785_v18, %s4009_s23 }
 0x7f8   :  { %v535_v19 = vpop.permute.xlu0 %534 }
 0x7f9   :  { %v537_v20 = vmul.f32 %v3783_v10, %v535_v19  ;;  %v1079_v19 = vld [vmem:[%s4595_s4 + $0x10] sm:$0xff] }
 0x7fb   :  { %539 = vrot.lane.b32.xlu1 %v537_v20, %s4010_s3  ;;  %v1080_v20 = vld [vmem:[%s4595_s4 + $0x18] sm:$0xff] }
 0x86d   :  { %v540_v21 = vpop.permute.xlu1 %539 }
 0x86e   :  { %543 = vst.msk [vmem:[#allocation3 + $0x10] sm:$0xff] %vm230_vm2, %v540_v21  ;;  %3330 = vmatmul.mubr.msk.f32.vlgmr.msra.gmra.mrb[4].mxu1 %vm230_vm2, %v540_v21  ;;  %v3644_v21 = vpack.c.bf16 %v1080_v20, %v1079_v19 }
 0x86f   :  { %3624 = vmatpush3.bf16.msra.mxu1 %v4116_v6  ;;  %3351 = vmatprep.mubr.msk.f32.mxu1 %vm4007_vm0, %v4008_v2 }
 0x870   :  { %3625 = vmatprep.subr.bf16.mxu1 %v4006_v1 }
 0x873   :  { %3627 = vmatpush3.bf16.msra.mxu1 %v4133_v11 }
 0x874   :  { %3634 = vmatprep.subr.bf16.mxu1 %v4006_v1 }
 0x941   :  { %v614_v23 = vpop.f32.mrb[4].mxu1 }
 0x942   :  { %v618_v24 = vadd.f32 %v614_v23, %v194_v22  ;;  %v3331_v25 = vpop.f32.mrb[5].mxu1  ;;  %v1069_v23 = vld [vmem:[#allocation3] sm:$0xff] }
 0x943   :  { %v1071_v25 = vld [vmem:[#allocation3 + $0x10] sm:$0xff] }
 0x944   :  { %3786 = vtanh.f32 %v618_v24  ;;  %v3062_v27 = vmul.f32 -1.442695, %v618_v24  ;;  %v1070_v24 = vld [vmem:[#allocation3 + $0x8] sm:$0xff] }
 0x946   :  { %3788 = vpow2.f32 %v3062_v27 }
 0x94e   :  { %v3787_v26 = vpop.eup %3786 }
 0x94f   :  { %628 = vrot.lane.b32.xlu0 %v3787_v26, %s4009_s23 }
 0x950   :  { %v3789_v28 = vpop.eup %3788 }
 0x951   :  { %v622_v29 = vadd.f32 1.0, %v3789_v28 }
 0x953   :  { %3790 = vrcp.f32 %v622_v29  ;;  %v209_v29 = vadd.f32 %v4153_v13, %v4205_v61 }
 0x95d   :  { %v3791_v30 = vpop.eup %3790 }
 0x95e   :  { %v626_v33 = vmul.f32 %v3791_v30, %v531_v17 }
 0x9c1   :  { %v629_v31 = vpop.permute.xlu0 %628 }
 0x9c2   :  { %v631_v32 = vmul.f32 %v3791_v30, %v629_v31 }
 0x9c4   :  { %633 = vrot.lane.b32.xlu1 %v631_v32, %s4010_s3 }
 0xa36   :  { %v634_v34 = vpop.permute.xlu1 %633 }
 0xa37   :  { %v636_v35 = vadd.f32 %v634_v34, %v626_v33 }
 0xa39   :  { %3792 = vtanh.f32 %v636_v35 }
 0xa43   :  { %v3793_v36 = vpop.eup %3792 }
 0xa44   :  { %639 = vrot.lane.b32.xlu0 %v3793_v36, %s4009_s23 }
 0xab6   :  { %v640_v37 = vpop.permute.xlu0 %639 }
 0xab7   :  { %v642_v38 = vmul.f32 %v3791_v30, %v640_v37 }
 0xab9   :  { %644 = vrot.lane.b32.xlu1 %v642_v38, %s4010_s3 }
 0xb2b   :  { %v645_v39 = vpop.permute.xlu1 %644 }
 0xb2c   :  { %648 = vst.msk [vmem:[#allocation3 + $0x18] sm:$0xff] %vm230_vm2, %v645_v39  ;;  %3341 = vmatmul.mubr.msk.f32.vlgmr.msra.gmra.mrb[10].mxu0 %vm230_vm2, %v645_v39 }
 0xb2d   :  { %3630 = vmatpush3.bf16.msra.mxu0 %v4116_v6  ;;  %3362 = vmatprep.mubr.msk.f32.mxu0 %vm4007_vm0, %v4008_v2 }
 0xb2e   :  { %3631 = vmatprep.subr.bf16.mxu0 %v4006_v1 }
 0xb31   :  { %3633 = vmatpush3.bf16.msra.mxu0 %v4133_v11 }
 0xb32   :  { %3641 = vmatprep.subr.bf16.mxu0 %v3640_v15 }
 0xb33   :  { %v1072_v26 = vld [vmem:[#allocation3 + $0x18] sm:$0xff] }
 0xbff   :  { %v719_v41 = vpop.f32.mrb[10].mxu0 }
 0xc00   :  { %v723_v42 = vadd.f32 %v719_v41, %v199_v40  ;;  %v3342_v43 = vpop.f32.mrb[11].mxu0 }
 0xc02   :  { %3794 = vtanh.f32 %v723_v42  ;;  %v3064_v45 = vmul.f32 -1.442695, %v723_v42 }
 0xc04   :  { %3796 = vpow2.f32 %v3064_v45 }
 0xc0c   :  { %v3795_v44 = vpop.eup %3794 }
 0xc0d   :  { %733 = vrot.lane.b32.xlu0 %v3795_v44, %s4009_s23 }
 0xc0e   :  { %v3797_v46 = vpop.eup %3796 }
 0xc0f   :  { %v727_v47 = vadd.f32 1.0, %v3797_v46 }
 0xc11   :  { %3798 = vrcp.f32 %v727_v47 }
 0xc1b   :  { %v3799_v48 = vpop.eup %3798 }
 0xc1c   :  { %v731_v51 = vmul.f32 %v3799_v48, %v636_v35 }
 0xc7f   :  { %v734_v49 = vpop.permute.xlu0 %733 }
 0xc80   :  { %v736_v50 = vmul.f32 %v3799_v48, %v734_v49  ;;  %v1225_v49 = vld [vmem:[%s4596_s5] sm:$0xff] }
 0xc82   :  { %738 = vrot.lane.b32.xlu1 %v736_v50, %s4010_s3  ;;  %v1226_v50 = vld [vmem:[%s4596_s5 + $0x8] sm:$0xff] }
 0xcf4   :  { %v739_v52 = vpop.permute.xlu1 %738 }
 0xcf5   :  { %v741_v53 = vadd.f32 %v739_v52, %v731_v51  ;;  %v4305_v51 = vpack.c.bf16 %v1226_v50, %v1225_v49  ;;  %v1227_v52 = vld [vmem:[%s4596_s5 + $0x10] sm:$0xff] }
 0xcf7   :  { %3800 = vtanh.f32 %v741_v53 }
 0xd01   :  { %v3801_v54 = vpop.eup %3800 }
 0xd02   :  { %744 = vrot.lane.b32.xlu0 %v3801_v54, %s4009_s23 }
 0xd74   :  { %v745_v55 = vpop.permute.xlu0 %744 }
 0xd75   :  { %v747_v56 = vmul.f32 %v3799_v48, %v745_v55 }
 0xd77   :  { %749 = vrot.lane.b32.xlu1 %v747_v56, %s4010_s3 }
 0xde9   :  { %v750_v57 = vpop.permute.xlu1 %749 }
 0xdea   :  { %753 = vst.msk [vmem:[#allocation3 + $0x20] sm:$0xff] %vm230_vm2, %v750_v57  ;;  %3352 = vmatmul.mubr.msk.f32.vlgmr.msra.gmra.mrb[6].mxu1 %vm230_vm2, %v750_v57 }
 0xdeb   :  { %3636 = vmatpush3.bf16.msra.mxu1 %v4116_v6  ;;  %3373 = vmatprep.mubr.msk.f32.mxu1 %vm4007_vm0, %v4008_v2 }
 0xdec   :  { %3637 = vmatprep.subr.bf16.mxu1 %v4006_v1 }
 0xdef   :  { %3639 = vmatpush3.bf16.msra.mxu1 %v4133_v11 }
 0xdf0   :  { %3648 = vmatprep.subr.bf16.mxu1 %v4006_v1 }
 0xdf1   :  { %v1073_v27 = vld [vmem:[#allocation3 + $0x20] sm:$0xff] }
 0xebd   :  { %v824_v62 = vpop.f32.mrb[6].mxu1 }
 0xebe   :  { %v828_v63 = vadd.f32 %v824_v62, %v204_v59  ;;  %v3353_v0 = vpop.f32.mrb[7].mxu1  ;;  %v214_v62 = vadd.f32 %v4203_v60, %v4153_v13 }
 0xec0   :  { %3802 = vtanh.f32 %v828_v63  ;;  %v3066_v6 = vmul.f32 -1.442695, %v828_v63 }
 0xec2   :  { %3804 = vpow2.f32 %v3066_v6  ;;  %v4341_v6 = vld [vmem:[%s4597_s6] ss:$0 sm:$0xff] }
 0xeca   :  { %v3803_v3 = vpop.eup %3802 }
 0xecb   :  { %838 = vrot.lane.b32.xlu0 %v3803_v3, %s4009_s23 }
 0xecc   :  { %v3805_v4 = vpop.eup %3804 }
 0xecd   :  { %v832_v5 = vadd.f32 1.0, %v3805_v4 }
 0xecf   :  { %3806 = vrcp.f32 %v832_v5 }
 0xed9   :  { %v3807_v7 = vpop.eup %3806 }
 0xeda   :  { %v836_v9 = vmul.f32 %v3807_v7, %v741_v53  ;;  %v1228_v53 = vld [vmem:[%s4596_s5 + $0x18] sm:$0xff] }
 0xedb   :  { %v4315_v54 = vpack.c.bf16 %v1228_v53, %v1227_v52 }
 0xf3d   :  { %v839_v8 = vpop.permute.xlu0 %838 }
 0xf3e   :  { %v841_v11 = vmul.f32 %v3807_v7, %v839_v8 }
 0xf40   :  { %843 = vrot.lane.b32.xlu1 %v841_v11, %s4010_s3 }
 0xfb2   :  { %v844_v10 = vpop.permute.xlu1 %843 }
 0xfb3   :  { %v846_v58 = vadd.f32 %v844_v10, %v836_v9 }
 0xfb5   :  { %3808 = vtanh.f32 %v846_v58 }
 0xfbf   :  { %v3809_v16 = vpop.eup %3808 }
 0xfc0   :  { %849 = vrot.lane.b32.xlu0 %v3809_v16, %s4009_s23 }
0x1032   :  { %v850_v17 = vpop.permute.xlu0 %849 }
0x1033   :  { %v852_v18 = vmul.f32 %v3807_v7, %v850_v17 }
0x1035   :  { %854 = vrot.lane.b32.xlu1 %v852_v18, %s4010_s3 }
0x10a7   :  { %v855_v22 = vpop.permute.xlu1 %854 }
0x10a8   :  { %858 = vst.msk [vmem:[#allocation3 + $0x28] sm:$0xff] %vm230_vm2, %v855_v22  ;;  %3363 = vmatmul.mubr.msk.f32.vlgmr.msra.gmra.mrb[12].mxu0 %vm230_vm2, %v855_v22 }
0x10a9   :  { %3643 = vmatpush3.bf16.msra.mxu0 %v3640_v15  ;;  %3384 = vmatprep.mubr.msk.f32.mxu0 %vm230_vm2, %v1069_v23 }
0x10aa   :  { %3645 = vmatprep.subr.bf16.mxu0 %v3644_v21 }
0x10ad   :  { %3647 = vmatpush3.bf16.msra.mxu0 %v3644_v21 }
0x10ae   :  { %3660 = vmatprep.subr.bf16.mxu0 %v4006_v1 }
0x10af   :  { %v1074_v28 = vld [vmem:[#allocation3 + $0x28] sm:$0xff] }
0x10b0   :  { %3385 = vmatmul.mubr.msk.f32.vlgmr.msra.gmra.mrb[14].mxu0 %vm230_vm2, %v1070_v24 }
0x10b1   :  { %3387 = vmatprep.mubr.msk.f32.mxu0 %vm230_vm2, %v1071_v25  ;;  %3662 = vmatpush3.bf16.msra.mxu0 %v4305_v51 }
0x10b2   :  { %3663 = vmatprep.subr.bf16.mxu0 %v4006_v1 }
0x10b4   :  { %3388 = vmatmul.mubr.msk.f32.gmra.mrb[16].mxu0 %vm230_vm2, %v1072_v26 }
0x10b5   :  { %3390 = vmatprep.mubr.msk.f32.mxu0 %vm230_vm2, %v1073_v27  ;;  %3665 = vmatpush3.bf16.msra.mxu0 %v4315_v54 }
0x10b6   :  { %3672 = vmatprep.subr.bf16.mxu0 %v4006_v1 }
0x10b8   :  { %3391 = vmatmul.mubr.msk.f32.gmra.mrb[18].mxu0 %vm230_vm2, %v1074_v28 }
0x117b   :  { %v929_v30 = vpop.f32.mrb[12].mxu0 }
0x117c   :  { %v933_v31 = vadd.f32 %v929_v30, %v209_v29  ;;  %v3364_v32 = vpop.f32.mrb[13].mxu0 }
0x117e   :  { %3810 = vtanh.f32 %v933_v31  ;;  %v3068_v40 = vmul.f32 -1.442695, %v933_v31 }
0x1180   :  { %3812 = vpow2.f32 %v3068_v40 }
0x1183   :  { %v4283_v33 = vpop.f32.mrb[14].mxu0 }
0x1184   :  { %v1178_v34 = vpop.f32.mrb[15].mxu0 }
0x1185   :  { %v1179_v4 = vadd.f32 %v4341_v6, %v1178_v34 }
0x1187   :  { %v4285_v35 = vpop.f32.mrb[16].mxu0 }
0x1188   :  { %v3811_v36 = vpop.eup %3810  ;;  %v4287_v37 = vpop.f32.mrb[17].mxu0 }
0x1189   :  { %943 = vrot.lane.b32.xlu0 %v3811_v36, %s4009_s23  ;;  %v1184_v36 = vadd.f32 %v4283_v33, %v4341_v6 }
0x118a   :  { %v3813_v61 = vpop.eup %3812 }
0x118b   :  { %v4290_v38 = vpop.f32.mrb[18].mxu0  ;;  %v937_v41 = vadd.f32 1.0, %v3813_v61 }
0x118c   :  { %v4292_v39 = vpop.f32.mrb[19].mxu0 }
0x118d   :  { %3814 = vrcp.f32 %v937_v41 }
0x1197   :  { %v3815_v42 = vpop.eup %3814 }
0x1198   :  { %v941_v45 = vmul.f32 %v3815_v42, %v846_v58 }
0x11fb   :  { %v944_v43 = vpop.permute.xlu0 %943 }
0x11fc   :  { %v946_v44 = vmul.f32 %v3815_v42, %v944_v43 }
0x11fe   :  { %948 = vrot.lane.b32.xlu1 %v946_v44, %s4010_s3 }
0x1270   :  { %v949_v46 = vpop.permute.xlu1 %948 }
0x1271   :  { %v4295_v47 = vadd.f32 %v949_v46, %v941_v45 }
0x1273   :  { %3816 = vtanh.f32 %v4295_v47 }
0x127d   :  { %v3817_v48 = vpop.eup %3816 }
0x127e   :  { %954 = vrot.lane.b32.xlu0 %v3817_v48, %s4009_s23 }
0x12f0   :  { %v955_v55 = vpop.permute.xlu0 %954 }
0x12f1   :  { %v957_v56 = vmul.f32 %v3815_v42, %v955_v55 }
0x12f3   :  { %959 = vrot.lane.b32.xlu1 %v957_v56, %s4010_s3 }
0x1365   :  { %v960_v57 = vpop.permute.xlu1 %959 }
0x1366   :  { %963 = vst.msk [vmem:[#allocation3 + $0x30] sm:$0xff] %vm230_vm2, %v960_v57  ;;  %3374 = vmatmul.mubr.msk.f32.vlgmr.msra.gmra.mrb[8].mxu1 %vm230_vm2, %v960_v57 }
0x1367   :  { %3650 = vmatpush3.bf16.msra.mxu1 %v4305_v51  ;;  %3404 = vmatprep.mubr.msk.f32.mxu1 %vm4007_vm0, %v4008_v2 }
0x1368   :  { %3651 = vmatprep.subr.bf16.mxu1 %v4006_v1 }
0x136b   :  { %3653 = vmatpush3.bf16.msra.mxu1 %v4315_v54 }
0x136c   :  { %3654 = vmatprep.subr.bf16.mxu1 %v4006_v1 }
0x136d   :  { %v1075_v59 = vld [vmem:[#allocation3 + $0x30] sm:$0xff] }
0x136e   :  { %3405 = vmatmul.mubr.f32.vlgmr.msra.gmra.mrb[10].mxu1 %v4008_v2  ;;  %3393 = vmatprep.mubr.msk.f32.mxu0 %vm230_vm2, %v1075_v59 }
0x136f   :  { %3656 = vmatpush3.bf16.msra.mxu1 %v4305_v51  ;;  %3415 = vmatprep.mubr.msk.f32.mxu1 %vm4007_vm0, %v4008_v2 }
0x1370   :  { %3657 = vmatprep.subr.bf16.mxu1 %v4006_v1 }
0x1373   :  { %3659 = vmatpush3.bf16.msra.mxu1 %v4315_v54 }
0x1374   :  { %3666 = vmatprep.subr.bf16.mxu1 %v4006_v1 }
0x1439   :  { %v1034_v63 = vpop.f32.mrb[8].mxu1 }
0x143a   :  { %v1038_v0 = vadd.f32 %v1034_v63, %v214_v62  ;;  %v3375_v3 = vpop.f32.mrb[9].mxu1 }
0x143c   :  { %v3070_v19 = vmul.f32 -1.442695, %v1038_v0 }
0x1441   :  { %v1296_v5 = vpop.f32.mrb[10].mxu1 }
0x1442   :  { %v1300_v7 = vadd.f32 %v1296_v5, %v1179_v4  ;;  %v3406_v8 = vpop.f32.mrb[11].mxu1 }
0x1444   :  { %3818 = vtanh.f32 %v1300_v7  ;;  %v3080_v9 = vmul.f32 -1.442695, %v1300_v7 }
0x1446   :  { %3820 = vpow2.f32 %v3080_v9 }
0x144e   :  { %v3819_v11 = vpop.eup %3818 }
0x144f   :  { %1310 = vrot.lane.b32.xlu0 %v3819_v11, %s4009_s23 }
0x1450   :  { %v3821_v13 = vpop.eup %3820 }
0x1451   :  { %v1304_v60 = vadd.f32 1.0, %v3821_v13 }
0x1453   :  { %3822 = vrcp.f32 %v1304_v60 }
0x145d   :  { %v3823_v10 = vpop.eup %3822 }
0x145e   :  { %v1308_v14 = vmul.f32 0.0, %v3823_v10 }
0x14c1   :  { %v1311_v58 = vpop.permute.xlu0 %1310 }
0x14c2   :  { %v1313_v12 = vmul.f32 %v3823_v10, %v1311_v58 }
0x14c4   :  { %1315 = vrot.lane.b32.xlu1 %v1313_v12, %s4010_s3 }
0x1536   :  { %v1316_v15 = vpop.permute.xlu1 %1315 }
0x1537   :  { %v1318_v16 = vadd.f32 %v1316_v15, %v1308_v14 }
0x1539   :  { %3824 = vtanh.f32 %v1318_v16 }
0x153a   :  { %3826 = vtanh.f32 %v1038_v0  ;;  %v1189_v0 = vadd.f32 %v4341_v6, %v4287_v37 }
0x153b   :  { %3828 = vpow2.f32 %v3070_v19 }
0x1543   :  { %v3825_v17 = vpop.eup %3824 }
0x1544   :  { %1321 = vrot.lane.b32.xlu0 %v3825_v17, %s4009_s23  ;;  %v3827_v18 = vpop.eup %3826 }
0x1545   :  { %v3829_v20 = vpop.eup %3828 }
0x1546   :  { %v1042_v21 = vadd.f32 1.0, %v3829_v20 }
0x1548   :  { %1048 = vrot.lane.b32.xlu0 %v3827_v18, %s4009_s23  ;;  %3830 = vrcp.f32 %v1042_v21  ;;  %v1194_v18 = vadd.f32 %v4285_v35, %v4341_v6 }
0x1552   :  { %v3831_v24 = vpop.eup %3830 }
0x1553   :  { %v1046_v28 = vmul.f32 %v3831_v24, %v4295_v47 }
0x15b6   :  { %v1322_v22 = vpop.permute.xlu0 %1321 }
0x15b7   :  { %v1324_v23 = vmul.f32 %v3823_v10, %v1322_v22 }
0x15b9   :  { %1326 = vrot.lane.b32.xlu1 %v1324_v23, %s4010_s3 }
0x15ba   :  { %v1049_v25 = vpop.permute.xlu0 %1048 }
0x15bb   :  { %v1051_v26 = vmul.f32 %v3831_v24, %v1049_v25 }
0x15bd   :  { %1053 = vrot.lane.b32.xlu0 %v1051_v26, %s4010_s3 }
0x162b   :  { %v1327_v27 = vpop.permute.xlu1 %1326 }
0x162c   :  { %1329 = vst.msk [vmem:[#allocation3] sm:$0xff] %vm230_vm2, %v1327_v27  ;;  %3416 = vmatmul.mubr.msk.f32.vlgmr.msra.gmra.mrb[12].mxu1 %vm230_vm2, %v1327_v27 }
0x162d   :  { %3668 = vmatpush3.bf16.msra.mxu1 %v4305_v51  ;;  %3437 = vmatprep.mubr.msk.f32.mxu1 %vm4007_vm0, %v4008_v2 }
0x162e   :  { %3669 = vmatprep.subr.bf16.mxu1 %v4006_v1 }
0x162f   :  { %v1054_v29 = vpop.permute.xlu0 %1053 }
0x1630   :  { %v1056_v30 = vadd.f32 %v1054_v29, %v1046_v28 }
0x1631   :  { %3671 = vmatpush3.bf16.msra.mxu1 %v4315_v54 }
0x1632   :  { %3832 = vtanh.f32 %v1056_v30  ;;  %3678 = vmatprep.subr.bf16.mxu1 %v4006_v1 }
0x163c   :  { %v3833_v31 = vpop.eup %3832 }
0x163d   :  { %1059 = vrot.lane.b32.xlu0 %v3833_v31, %s4009_s23 }
0x16af   :  { %v1060_v32 = vpop.permute.xlu0 %1059 }
0x16b0   :  { %v1062_v34 = vmul.f32 %v3831_v24, %v1060_v32 }
0x16b2   :  { %1064 = vrot.lane.b32.xlu0 %v1062_v34, %s4010_s3 }
0x16ff   :  { %v1399_v40 = vpop.f32.mrb[12].mxu1 }
0x1700   :  { %v1403_v61 = vadd.f32 %v1399_v40, %v1184_v36  ;;  %v3417_v41 = vpop.f32.mrb[13].mxu1  ;;  %v1199_v40 = vadd.f32 %v4341_v6, %v4292_v39 }
0x1702   :  { %3834 = vtanh.f32 %v1403_v61  ;;  %v3082_v45 = vmul.f32 -1.442695, %v1403_v61 }
0x1704   :  { %3836 = vpow2.f32 %v3082_v45 }
0x170c   :  { %v3835_v42 = vpop.eup %3834 }
0x170d   :  { %1413 = vrot.lane.b32.xlu1 %v3835_v42, %s4009_s23 }
0x170e   :  { %v3837_v46 = vpop.eup %3836 }
0x170f   :  { %v1407_v33 = vadd.f32 1.0, %v3837_v46 }
0x1711   :  { %3838 = vrcp.f32 %v1407_v33 }
0x171b   :  { %v3839_v47 = vpop.eup %3838 }
0x171c   :  { %v1411_v50 = vmul.f32 %v3839_v47, %v1318_v16 }
0x1724   :  { %v1065_v43 = vpop.permute.xlu0 %1064 }
0x1725   :  { %1068 = vst.msk [vmem:[#allocation3 + $0x38] sm:$0xff] %vm230_vm2, %v1065_v43 }
0x172c   :  { %v1076_v44 = vld [vmem:[#allocation3 + $0x38] sm:$0xff] }
0x172d   :  { %3394 = vmatmul.mubr.msk.f32.gmra.mrb[20].mxu0 %vm230_vm2, %v1076_v44 }
0x172e   :  { %3426 = vmatprep.mubr.msk.f32.mxu0 %vm4007_vm0, %v4008_v2 }
0x177f   :  { %v1414_v48 = vpop.permute.xlu1 %1413 }
0x1780   :  { %v1416_v49 = vmul.f32 %v3839_v47, %v1414_v48 }
0x1782   :  { %1418 = vrot.lane.b32.xlu1 %v1416_v49, %s4010_s3 }
0x17f4   :  { %v1419_v52 = vpop.permute.xlu1 %1418 }
0x17f5   :  { %v1421_v53 = vadd.f32 %v1419_v52, %v1411_v50 }
0x17f7   :  { %3840 = vtanh.f32 %v1421_v53 }
0x1800   :  { %v4369_v55 = vpop.f32.mrb[20].mxu0 }
0x1801   :  { %v3841_v56 = vpop.eup %3840  ;;  %v4371_v57 = vpop.f32.mrb[21].mxu0 }
0x1802   :  { %1424 = vrot.lane.b32.xlu1 %v3841_v56, %s4009_s23 }
0x1874   :  { %v1425_v59 = vpop.permute.xlu1 %1424 }
0x1875   :  { %v1427_v62 = vmul.f32 %v3839_v47, %v1425_v59 }
0x1877   :  { %1429 = vrot.lane.b32.xlu1 %v1427_v62, %s4010_s3  ;;  %v1204_v62 = vadd.f32 %v4290_v38, %v4341_v6 }
0x18e9   :  { %v1430_v63 = vpop.permute.xlu1 %1429 }
0x18ea   :  { %1432 = vst.msk [vmem:[#allocation3 + $0x8] sm:$0xff] %vm230_vm2, %v1430_v63  ;;  %3427 = vmatmul.mubr.msk.f32.vlgmr.msra.gmra.mrb[22].mxu0 %vm230_vm2, %v1430_v63 }
0x18eb   :  { %3674 = vmatpush3.bf16.msra.mxu0 %v4305_v51  ;;  %3448 = vmatprep.mubr.msk.f32.mxu0 %vm4007_vm0, %v4008_v2 }
0x18ec   :  { %3675 = vmatprep.subr.bf16.mxu0 %v4006_v1 }
0x18ef   :  { %3677 = vmatpush3.bf16.msra.mxu0 %v4315_v54 }
0x18f0   :  { %3684 = vmatprep.subr.bf16.mxu0 %v4006_v1 }
0x19bd   :  { %v1502_v3 = vpop.f32.mrb[22].mxu0 }
0x19be   :  { %v1506_v4 = vadd.f32 %v1502_v3, %v1189_v0  ;;  %v3428_v5 = vpop.f32.mrb[23].mxu0 }
0x19c0   :  { %3842 = vtanh.f32 %v1506_v4  ;;  %v3084_v8 = vmul.f32 -1.442695, %v1506_v4 }
0x19c2   :  { %3844 = vpow2.f32 %v3084_v8 }
0x19ca   :  { %v3843_v7 = vpop.eup %3842 }
0x19cb   :  { %1516 = vrot.lane.b32.xlu0 %v3843_v7, %s4009_s23 }
0x19cc   :  { %v3845_v11 = vpop.eup %3844 }
0x19cd   :  { %v1510_v9 = vadd.f32 1.0, %v3845_v11 }
0x19cf   :  { %3846 = vrcp.f32 %v1510_v9 }
0x19d9   :  { %v3847_v13 = vpop.eup %3846 }
0x19da   :  { %v1514_v58 = vmul.f32 %v3847_v13, %v1421_v53 }
0x1a3d   :  { %v1517_v60 = vpop.permute.xlu0 %1516 }
0x1a3e   :  { %v1519_v10 = vmul.f32 %v3847_v13, %v1517_v60  ;;  %v2059_v60 = vld [vmem:[#allocation5] sm:$0xff] }
0x1a40   :  { %1521 = vrot.lane.b32.xlu1 %v1519_v10, %s4010_s3  ;;  %v2060_v10 = vld [vmem:[#allocation5 + $0x8] sm:$0xff] }
0x1ab2   :  { %v1522_v12 = vpop.permute.xlu1 %1521 }
0x1ab3   :  { %v1524_v37 = vadd.f32 %v1522_v12, %v1514_v58  ;;  %v3696_v58 = vpack.c.bf16 %v2060_v10, %v2059_v60 }
0x1ab5   :  { %3848 = vtanh.f32 %v1524_v37 }
0x1abf   :  { %v3849_v14 = vpop.eup %3848 }
0x1ac0   :  { %1527 = vrot.lane.b32.xlu0 %v3849_v14, %s4009_s23 }
0x1b32   :  { %v1528_v15 = vpop.permute.xlu0 %1527 }
0x1b33   :  { %v1530_v16 = vmul.f32 %v3847_v13, %v1528_v15  ;;  %v2061_v15 = vld [vmem:[#allocation5 + $0x10] sm:$0xff] }
0x1b35   :  { %1532 = vrot.lane.b32.xlu1 %v1530_v16, %s4010_s3  ;;  %v2062_v16 = vld [vmem:[#allocation5 + $0x18] sm:$0xff] }
0x1ba7   :  { %v1533_v17 = vpop.permute.xlu1 %1532 }
0x1ba8   :  { %1535 = vst.msk [vmem:[#allocation3 + $0x10] sm:$0xff] %vm230_vm2, %v1533_v17  ;;  %3438 = vmatmul.mubr.msk.f32.vlgmr.msra.gmra.mrb[14].mxu1 %vm230_vm2, %v1533_v17  ;;  %v3700_v17 = vpack.c.bf16 %v2062_v16, %v2061_v15 }
0x1ba9   :  { %3680 = vmatpush3.bf16.msra.mxu1 %v4305_v51  ;;  %3459 = vmatprep.mubr.msk.f32.mxu1 %vm4007_vm0, %v4008_v2 }
0x1baa   :  { %3681 = vmatprep.subr.bf16.mxu1 %v4006_v1 }
0x1bad   :  { %3683 = vmatpush3.bf16.msra.mxu1 %v4315_v54 }
0x1bae   :  { %3690 = vmatprep.subr.bf16.mxu1 %v4006_v1 }
0x1c7b   :  { %v1605_v19 = vpop.f32.mrb[14].mxu1 }
0x1c7c   :  { %v1609_v20 = vadd.f32 %v1605_v19, %v1194_v18  ;;  %v3439_v21 = vpop.f32.mrb[15].mxu1  ;;  %v2051_v19 = vld [vmem:[#allocation3] sm:$0xff] }
0x1c7d   :  { %v2053_v21 = vld [vmem:[#allocation3 + $0x10] sm:$0xff] }
0x1c7e   :  { %3850 = vtanh.f32 %v1609_v20  ;;  %v3086_v23 = vmul.f32 -1.442695, %v1609_v20  ;;  %v2052_v20 = vld [vmem:[#allocation3 + $0x8] sm:$0xff] }
0x1c80   :  { %3852 = vpow2.f32 %v3086_v23 }
0x1c88   :  { %v3851_v22 = vpop.eup %3850 }
0x1c89   :  { %1619 = vrot.lane.b32.xlu0 %v3851_v22, %s4009_s23 }
0x1c8a   :  { %v3853_v24 = vpop.eup %3852 }
0x1c8b   :  { %v1613_v25 = vadd.f32 1.0, %v3853_v24 }
0x1c8d   :  { %3854 = vrcp.f32 %v1613_v25  ;;  %v1209_v25 = vadd.f32 %v4341_v6, %v4371_v57 }
0x1c97   :  { %v3855_v26 = vpop.eup %3854 }
0x1c98   :  { %v1617_v29 = vmul.f32 %v3855_v26, %v1524_v37 }
0x1cfb   :  { %v1620_v27 = vpop.permute.xlu0 %1619 }
0x1cfc   :  { %v1622_v28 = vmul.f32 %v3855_v26, %v1620_v27 }
0x1cfe   :  { %1624 = vrot.lane.b32.xlu1 %v1622_v28, %s4010_s3 }
0x1d70   :  { %v1625_v30 = vpop.permute.xlu1 %1624 }
0x1d71   :  { %v1627_v35 = vadd.f32 %v1625_v30, %v1617_v29 }
0x1d73   :  { %3856 = vtanh.f32 %v1627_v35 }
0x1d7d   :  { %v3857_v31 = vpop.eup %3856 }
0x1d7e   :  { %1630 = vrot.lane.b32.xlu0 %v3857_v31, %s4009_s23 }
0x1df0   :  { %v1631_v32 = vpop.permute.xlu0 %1630 }
0x1df1   :  { %v1633_v34 = vmul.f32 %v3855_v26, %v1631_v32 }
0x1df3   :  { %1635 = vrot.lane.b32.xlu1 %v1633_v34, %s4010_s3 }
0x1e65   :  { %v1636_v36 = vpop.permute.xlu1 %1635 }
0x1e66   :  { %1638 = vst.msk [vmem:[#allocation3 + $0x18] sm:$0xff] %vm230_vm2, %v1636_v36  ;;  %3449 = vmatmul.mubr.msk.f32.vlgmr.msra.gmra.mrb[24].mxu0 %vm230_vm2, %v1636_v36 }
0x1e67   :  { %3686 = vmatpush3.bf16.msra.mxu0 %v4305_v51  ;;  %3470 = vmatprep.mubr.msk.f32.mxu0 %vm4007_vm0, %v4008_v2 }
0x1e68   :  { %3687 = vmatprep.subr.bf16.mxu0 %v4006_v1 }
0x1e6b   :  { %3689 = vmatpush3.bf16.msra.mxu0 %v4315_v54 }
0x1e6c   :  { %3697 = vmatprep.subr.bf16.mxu0 %v3696_v58 }
0x1e6d   :  { %v2054_v22 = vld [vmem:[#allocation3 + $0x18] sm:$0xff] }
0x1f39   :  { %v1708_v61 = vpop.f32.mrb[24].mxu0 }
0x1f3a   :  { %v1712_v41 = vadd.f32 %v1708_v61, %v1199_v40  ;;  %v3450_v42 = vpop.f32.mrb[25].mxu0 }
0x1f3c   :  { %3858 = vtanh.f32 %v1712_v41  ;;  %v3088_v44 = vmul.f32 -1.442695, %v1712_v41 }
0x1f3e   :  { %3860 = vpow2.f32 %v3088_v44 }
0x1f46   :  { %v3859_v43 = vpop.eup %3858 }
0x1f47   :  { %1722 = vrot.lane.b32.xlu0 %v3859_v43, %s4009_s23 }
0x1f48   :  { %v3861_v45 = vpop.eup %3860 }
0x1f49   :  { %v1716_v46 = vadd.f32 1.0, %v3861_v45 }
0x1f4b   :  { %3862 = vrcp.f32 %v1716_v46 }
0x1f55   :  { %v3863_v33 = vpop.eup %3862 }
0x1f56   :  { %v1720_v49 = vmul.f32 %v3863_v33, %v1627_v35 }
0x1fb9   :  { %v1723_v47 = vpop.permute.xlu0 %1722 }
0x1fba   :  { %v1725_v48 = vmul.f32 %v3863_v33, %v1723_v47  ;;  %v2207_v47 = vld [vmem:[#allocation7] sm:$0xff] }
0x1fbc   :  { %1727 = vrot.lane.b32.xlu1 %v1725_v48, %s4010_s3  ;;  %v2208_v48 = vld [vmem:[#allocation7 + $0x8] sm:$0xff] }
0x202e   :  { %v1728_v50 = vpop.permute.xlu1 %1727 }
0x202f   :  { %v1730_v39 = vadd.f32 %v1728_v50, %v1720_v49  ;;  %v4457_v49 = vpack.c.bf16 %v2208_v48, %v2207_v47  ;;  %v2209_v50 = vld [vmem:[#allocation7 + $0x10] sm:$0xff] }
0x2031   :  { %3864 = vtanh.f32 %v1730_v39 }
0x203b   :  { %v3865_v52 = vpop.eup %3864 }
0x203c   :  { %1733 = vrot.lane.b32.xlu0 %v3865_v52, %s4009_s23 }
0x20ae   :  { %v1734_v53 = vpop.permute.xlu0 %1733 }
0x20af   :  { %v1736_v56 = vmul.f32 %v3863_v33, %v1734_v53 }
0x20b1   :  { %1738 = vrot.lane.b32.xlu1 %v1736_v56, %s4010_s3 }
0x2123   :  { %v1739_v59 = vpop.permute.xlu1 %1738 }
0x2124   :  { %1741 = vst.msk [vmem:[#allocation3 + $0x20] sm:$0xff] %vm230_vm2, %v1739_v59  ;;  %3460 = vmatmul.mubr.msk.f32.vlgmr.msra.gmra.mrb[16].mxu1 %vm230_vm2, %v1739_v59 }
0x2125   :  { %3692 = vmatpush3.bf16.msra.mxu1 %v4305_v51  ;;  %3481 = vmatprep.mubr.msk.f32.mxu1 %vm4007_vm0, %v4008_v2 }
0x2126   :  { %3693 = vmatprep.subr.bf16.mxu1 %v4006_v1 }
0x2129   :  { %3695 = vmatpush3.bf16.msra.mxu1 %v4315_v54 }
0x212a   :  { %3704 = vmatprep.subr.bf16.mxu1 %v4006_v1 }
0x212b   :  { %v2055_v23 = vld [vmem:[#allocation3 + $0x20] sm:$0xff] }
0x21f7   :  { %v1811_v63 = vpop.f32.mrb[16].mxu1 }
0x21f8   :  { %v1815_v0 = vadd.f32 %v1811_v63, %v1204_v62  ;;  %v3461_v3 = vpop.f32.mrb[17].mxu1  ;;  %v1214_v63 = vadd.f32 %v4369_v55, %v4341_v6 }
0x21fa   :  { %3866 = vtanh.f32 %v1815_v0  ;;  %v3090_v51 = vmul.f32 -1.442695, %v1815_v0 }
0x21fc   :  { %3868 = vpow2.f32 %v3090_v51  ;;  %v4487_v51 = vld [vmem:[%s4600_s9] ss:$0 sm:$0xff] }
0x2204   :  { %v3867_v4 = vpop.eup %3866 }
0x2205   :  { %1825 = vrot.lane.b32.xlu0 %v3867_v4, %s4009_s23 }
0x2206   :  { %v3869_v5 = vpop.eup %3868 }
0x2207   :  { %v1819_v7 = vadd.f32 1.0, %v3869_v5 }
0x2209   :  { %3870 = vrcp.f32 %v1819_v7 }
0x2213   :  { %v3871_v8 = vpop.eup %3870 }
0x2214   :  { %v1823_v9 = vmul.f32 %v3871_v8, %v1730_v39  ;;  %v2210_v39 = vld [vmem:[#allocation7 + $0x18] sm:$0xff] }
0x2215   :  { %v4461_v52 = vpack.c.bf16 %v2210_v39, %v2209_v50 }
0x2277   :  { %v1826_v11 = vpop.permute.xlu0 %1825 }
0x2278   :  { %v1828_v54 = vmul.f32 %v3871_v8, %v1826_v11 }
0x227a   :  { %1830 = vrot.lane.b32.xlu1 %v1828_v54, %s4010_s3 }
0x22ec   :  { %v1831_v13 = vpop.permute.xlu1 %1830 }
0x22ed   :  { %v1833_v38 = vadd.f32 %v1831_v13, %v1823_v9 }
0x22ef   :  { %3872 = vtanh.f32 %v1833_v38 }
0x22f9   :  { %v3873_v12 = vpop.eup %3872 }
0x22fa   :  { %1836 = vrot.lane.b32.xlu0 %v3873_v12, %s4009_s23 }
0x236c   :  { %v1837_v37 = vpop.permute.xlu0 %1836 }
0x236d   :  { %v1839_v14 = vmul.f32 %v3871_v8, %v1837_v37 }
0x236f   :  { %1841 = vrot.lane.b32.xlu1 %v1839_v14, %s4010_s3 }
0x23e1   :  { %v1842_v18 = vpop.permute.xlu1 %1841 }
0x23e2   :  { %1844 = vst.msk [vmem:[#allocation3 + $0x28] sm:$0xff] %vm230_vm2, %v1842_v18  ;;  %3471 = vmatmul.mubr.msk.f32.vlgmr.msra.gmra.mrb[26].mxu0 %vm230_vm2, %v1842_v18 }
0x23e3   :  { %3699 = vmatpush3.bf16.msra.mxu0 %v3696_v58  ;;  %3492 = vmatprep.mubr.msk.f32.mxu0 %vm230_vm2, %v2051_v19 }
0x23e4   :  { %3701 = vmatprep.subr.bf16.mxu0 %v3700_v17 }
0x23e7   :  { %3703 = vmatpush3.bf16.msra.mxu0 %v3700_v17 }
0x23e8   :  { %3716 = vmatprep.subr.bf16.mxu0 %v4006_v1 }
0x23e9   :  { %v2056_v24 = vld [vmem:[#allocation3 + $0x28] sm:$0xff] }
0x23ea   :  { %3493 = vmatmul.mubr.msk.f32.vlgmr.msra.gmra.mrb[28].mxu0 %vm230_vm2, %v2052_v20 }
0x23eb   :  { %3495 = vmatprep.mubr.msk.f32.mxu0 %vm230_vm2, %v2053_v21  ;;  %3718 = vmatpush3.bf16.msra.mxu0 %v4457_v49 }
0x23ec   :  { %3719 = vmatprep.subr.bf16.mxu0 %v4006_v1 }
0x23ee   :  { %3496 = vmatmul.mubr.msk.f32.gmra.mrb[30].mxu0 %vm230_vm2, %v2054_v22 }
0x23ef   :  { %3498 = vmatprep.mubr.msk.f32.mxu0 %vm230_vm2, %v2055_v23  ;;  %3721 = vmatpush3.bf16.msra.mxu0 %v4461_v52 }
0x23f0   :  { %3728 = vmatprep.subr.bf16.mxu0 %v4006_v1 }
0x23f2   :  { %3499 = vmatmul.mubr.msk.f32.gmra.mrb[32].mxu0 %vm230_vm2, %v2056_v24 }
0x24b5   :  { %v1914_v26 = vpop.f32.mrb[26].mxu0 }
0x24b6   :  { %v1918_v27 = vadd.f32 %v1914_v26, %v1209_v25  ;;  %v3472_v28 = vpop.f32.mrb[27].mxu0 }
0x24b8   :  { %3874 = vtanh.f32 %v1918_v27  ;;  %v3092_v40 = vmul.f32 -1.442695, %v1918_v27 }
0x24ba   :  { %3876 = vpow2.f32 %v3092_v40 }
0x24bd   :  { %v4441_v29 = vpop.f32.mrb[28].mxu0 }
0x24be   :  { %v2160_v30 = vpop.f32.mrb[29].mxu0 }
0x24bf   :  { %v2161_v5 = vadd.f32 %v4487_v51, %v2160_v30 }
0x24c1   :  { %v4443_v35 = vpop.f32.mrb[30].mxu0 }
0x24c2   :  { %v3875_v31 = vpop.eup %3874  ;;  %v4445_v32 = vpop.f32.mrb[31].mxu0 }
0x24c3   :  { %1928 = vrot.lane.b32.xlu0 %v3875_v31, %s4009_s23  ;;  %v2166_v31 = vadd.f32 %v4441_v29, %v4487_v51 }
0x24c4   :  { %v3877_v57 = vpop.eup %3876 }
0x24c5   :  { %v4448_v34 = vpop.f32.mrb[32].mxu0  ;;  %v1922_v61 = vadd.f32 1.0, %v3877_v57 }
0x24c6   :  { %v4450_v36 = vpop.f32.mrb[33].mxu0 }
0x24c7   :  { %3878 = vrcp.f32 %v1922_v61 }
0x24d1   :  { %v3879_v41 = vpop.eup %3878 }
0x24d2   :  { %v1926_v44 = vmul.f32 %v3879_v41, %v1833_v38 }
0x2535   :  { %v1929_v42 = vpop.permute.xlu0 %1928 }
0x2536   :  { %v1931_v43 = vmul.f32 %v3879_v41, %v1929_v42 }
0x2538   :  { %1933 = vrot.lane.b32.xlu1 %v1931_v43, %s4010_s3 }
0x25aa   :  { %v1934_v45 = vpop.permute.xlu1 %1933 }
0x25ab   :  { %v4453_v46 = vadd.f32 %v1934_v45, %v1926_v44 }
0x25ad   :  { %3880 = vtanh.f32 %v4453_v46 }
0x25b7   :  { %v3881_v33 = vpop.eup %3880 }
0x25b8   :  { %1939 = vrot.lane.b32.xlu0 %v3881_v33, %s4009_s23 }
0x262a   :  { %v1940_v53 = vpop.permute.xlu0 %1939 }
0x262b   :  { %v1942_v56 = vmul.f32 %v3879_v41, %v1940_v53 }
0x262d   :  { %1944 = vrot.lane.b32.xlu1 %v1942_v56, %s4010_s3 }
0x269f   :  { %v1945_v59 = vpop.permute.xlu1 %1944 }
0x26a0   :  { %1947 = vst.msk [vmem:[#allocation3 + $0x30] sm:$0xff] %vm230_vm2, %v1945_v59  ;;  %3482 = vmatmul.mubr.msk.f32.vlgmr.msra.gmra.mrb[18].mxu1 %vm230_vm2, %v1945_v59 }
0x26a1   :  { %3706 = vmatpush3.bf16.msra.mxu1 %v4457_v49  ;;  %3512 = vmatprep.mubr.msk.f32.mxu1 %vm4007_vm0, %v4008_v2 }
0x26a2   :  { %3707 = vmatprep.subr.bf16.mxu1 %v4006_v1 }
0x26a5   :  { %3709 = vmatpush3.bf16.msra.mxu1 %v4461_v52 }
0x26a6   :  { %3710 = vmatprep.subr.bf16.mxu1 %v4006_v1 }
0x26a7   :  { %v2057_v62 = vld [vmem:[#allocation3 + $0x30] sm:$0xff] }
0x26a8   :  { %3513 = vmatmul.mubr.f32.vlgmr.msra.gmra.mrb[20].mxu1 %v4008_v2  ;;  %3501 = vmatprep.mubr.msk.f32.mxu0 %vm230_vm2, %v2057_v62 }
0x26a9   :  { %3712 = vmatpush3.bf16.msra.mxu1 %v4457_v49  ;;  %3523 = vmatprep.mubr.msk.f32.mxu1 %vm4007_vm0, %v4008_v2 }
0x26aa   :  { %3713 = vmatprep.subr.bf16.mxu1 %v4006_v1 }
0x26ad   :  { %3715 = vmatpush3.bf16.msra.mxu1 %v4461_v52 }
0x26ae   :  { %3722 = vmatprep.subr.bf16.mxu1 %v4006_v1 }
0x2773   :  { %v2017_v0 = vpop.f32.mrb[18].mxu1 }
0x2774   :  { %v2021_v3 = vadd.f32 %v2017_v0, %v1214_v63  ;;  %v3483_v4 = vpop.f32.mrb[19].mxu1 }
0x2776   :  { %v3094_v15 = vmul.f32 -1.442695, %v2021_v3 }
0x277b   :  { %v2278_v7 = vpop.f32.mrb[20].mxu1 }
0x277c   :  { %v2282_v8 = vadd.f32 %v2278_v7, %v2161_v5  ;;  %v3514_v11 = vpop.f32.mrb[21].mxu1 }
0x277e   :  { %3882 = vtanh.f32 %v2282_v8  ;;  %v3104_v9 = vmul.f32 -1.442695, %v2282_v8 }
0x2780   :  { %3884 = vpow2.f32 %v3104_v9 }
0x2788   :  { %v3883_v54 = vpop.eup %3882 }
0x2789   :  { %2292 = vrot.lane.b32.xlu0 %v3883_v54, %s4009_s23 }
0x278a   :  { %v3885_v6 = vpop.eup %3884 }
0x278b   :  { %v2286_v55 = vadd.f32 1.0, %v3885_v6 }
0x278d   :  { %3886 = vrcp.f32 %v2286_v55 }
0x2797   :  { %v3887_v13 = vpop.eup %3886 }
0x2798   :  { %v2290_v10 = vmul.f32 0.0, %v3887_v13 }
0x27fb   :  { %v2293_v38 = vpop.permute.xlu0 %2292 }
0x27fc   :  { %v2295_v60 = vmul.f32 %v3887_v13, %v2293_v38 }
0x27fe   :  { %2297 = vrot.lane.b32.xlu1 %v2295_v60, %s4010_s3 }
0x2870   :  { %v2298_v58 = vpop.permute.xlu1 %2297 }
0x2871   :  { %v2300_v12 = vadd.f32 %v2298_v58, %v2290_v10 }
0x2873   :  { %3888 = vtanh.f32 %v2300_v12 }
0x2874   :  { %3890 = vtanh.f32 %v2021_v3  ;;  %v2171_v3 = vadd.f32 %v4487_v51, %v4445_v32 }
0x2875   :  { %3892 = vpow2.f32 %v3094_v15 }
0x287d   :  { %v3889_v37 = vpop.eup %3888 }
0x287e   :  { %2303 = vrot.lane.b32.xlu0 %v3889_v37, %s4009_s23  ;;  %v3891_v14 = vpop.eup %3890 }
0x287f   :  { %v3893_v16 = vpop.eup %3892 }
0x2880   :  { %v2025_v17 = vadd.f32 1.0, %v3893_v16 }
0x2882   :  { %2031 = vrot.lane.b32.xlu0 %v3891_v14, %s4009_s23  ;;  %3894 = vrcp.f32 %v2025_v17  ;;  %v2176_v14 = vadd.f32 %v4443_v35, %v4487_v51 }
0x288c   :  { %v3895_v20 = vpop.eup %3894 }
0x288d   :  { %v2029_v24 = vmul.f32 %v3895_v20, %v4453_v46 }
0x28f0   :  { %v2304_v18 = vpop.permute.xlu0 %2303 }
0x28f1   :  { %v2306_v19 = vmul.f32 %v3887_v13, %v2304_v18 }
0x28f3   :  { %2309 = vrot.lane.b32.xlu1 %v2306_v19, %s4010_s3 }
0x28f4   :  { %v2032_v21 = vpop.permute.xlu0 %2031 }
0x28f5   :  { %v2034_v22 = vmul.f32 %v3895_v20, %v2032_v21 }
0x28f7   :  { %2036 = vrot.lane.b32.xlu0 %v2034_v22, %s4010_s3 }
0x2965   :  { %v2310_v23 = vpop.permute.xlu1 %2309 }
0x2966   :  { %3524 = vmatmul.mubr.msk.f32.vlgmr.msra.gmra.mrb[22].mxu1 %vm230_vm2, %v2310_v23 }
0x2967   :  { %3724 = vmatpush3.bf16.msra.mxu1 %v4457_v49  ;;  %3545 = vmatprep.mubr.msk.f32.mxu1 %vm4007_vm0, %v4008_v2 }
0x2968   :  { %3725 = vmatprep.subr.bf16.mxu1 %v4006_v1 }
0x2969   :  { %v2037_v25 = vpop.permute.xlu0 %2036 }
0x296a   :  { %v2039_v26 = vadd.f32 %v2037_v25, %v2029_v24 }
0x296b   :  { %3727 = vmatpush3.bf16.msra.mxu1 %v4461_v52 }
0x296c   :  { %3896 = vtanh.f32 %v2039_v26  ;;  %3734 = vmatprep.subr.bf16.mxu1 %v4006_v1 }
0x2976   :  { %v3897_v27 = vpop.eup %3896 }
0x2977   :  { %2042 = vrot.lane.b32.xlu0 %v3897_v27, %s4009_s23 }
0x29e9   :  { %v2043_v28 = vpop.permute.xlu0 %2042 }
0x29ea   :  { %v2045_v30 = vmul.f32 %v3895_v20, %v2043_v28 }
0x29ec   :  { %2047 = vrot.lane.b32.xlu0 %v2045_v30, %s4010_s3 }
0x2a39   :  { %v2379_v40 = vpop.f32.mrb[22].mxu1 }
0x2a3a   :  { %v2383_v57 = vadd.f32 %v2379_v40, %v2166_v31  ;;  %v3525_v61 = vpop.f32.mrb[23].mxu1  ;;  %v2181_v40 = vadd.f32 %v4487_v51, %v4450_v36 }
0x2a3c   :  { %3898 = vtanh.f32 %v2383_v57  ;;  %v3106_v44 = vmul.f32 -1.442695, %v2383_v57 }
0x2a3e   :  { %3900 = vpow2.f32 %v3106_v44 }
0x2a46   :  { %v3899_v41 = vpop.eup %3898 }
0x2a47   :  { %2393 = vrot.lane.b32.xlu1 %v3899_v41, %s4009_s23 }
0x2a48   :  { %v3901_v45 = vpop.eup %3900 }
0x2a49   :  { %v2387_v29 = vadd.f32 1.0, %v3901_v45 }
0x2a4b   :  { %3902 = vrcp.f32 %v2387_v29 }
0x2a55   :  { %v3903_v46 = vpop.eup %3902 }
0x2a56   :  { %v2391_v48 = vmul.f32 %v3903_v46, %v2300_v12 }
0x2a5e   :  { %v2048_v42 = vpop.permute.xlu0 %2047 }
0x2a5f   :  { %2050 = vst.msk [vmem:[#allocation3 + $0x38] sm:$0xff] %vm230_vm2, %v2048_v42 }
0x2a66   :  { %v2058_v43 = vld [vmem:[#allocation3 + $0x38] sm:$0xff] }
0x2a67   :  { %3502 = vmatmul.mubr.msk.f32.gmra.mrb[34].mxu0 %vm230_vm2, %v2058_v43 }
0x2a68   :  { %3534 = vmatprep.mubr.msk.f32.mxu0 %vm4007_vm0, %v4008_v2 }
0x2ab9   :  { %v2394_v33 = vpop.permute.xlu1 %2393 }
0x2aba   :  { %v2396_v47 = vmul.f32 %v3903_v46, %v2394_v33 }
0x2abc   :  { %2398 = vrot.lane.b32.xlu1 %v2396_v47, %s4010_s3 }
0x2b2e   :  { %v2399_v50 = vpop.permute.xlu1 %2398 }
0x2b2f   :  { %v2401_v39 = vadd.f32 %v2399_v50, %v2391_v48 }
0x2b31   :  { %3904 = vtanh.f32 %v2401_v39 }
0x2b3a   :  { %v4514_v53 = vpop.f32.mrb[34].mxu0 }
0x2b3b   :  { %v3905_v56 = vpop.eup %3904  ;;  %v4516_v59 = vpop.f32.mrb[35].mxu0 }
0x2b3c   :  { %2404 = vrot.lane.b32.xlu1 %v3905_v56, %s4009_s23 }
0x2bae   :  { %v2405_v62 = vpop.permute.xlu1 %2404 }
0x2baf   :  { %v2407_v63 = vmul.f32 %v3903_v46, %v2405_v62 }
0x2bb1   :  { %2410 = vrot.lane.b32.xlu1 %v2407_v63, %s4010_s3  ;;  %v2186_v63 = vadd.f32 %v4448_v34, %v4487_v51 }
0x2c23   :  { %v2411_v0 = vpop.permute.xlu1 %2410 }
0x2c24   :  { %3535 = vmatmul.mubr.msk.f32.vlgmr.msra.gmra.mrb[36].mxu0 %vm230_vm2, %v2411_v0 }
0x2c25   :  { %3730 = vmatpush3.bf16.msra.mxu0 %v4457_v49  ;;  %3556 = vmatprep.mubr.msk.f32.mxu0 %vm4007_vm0, %v4008_v2 }
0x2c26   :  { %3731 = vmatprep.subr.bf16.mxu0 %v4006_v1 }
0x2c29   :  { %3733 = vmatpush3.bf16.msra.mxu0 %v4461_v52 }
0x2c2a   :  { %3740 = vmatprep.subr.bf16.mxu0 %v4006_v1 }
0x2cf7   :  { %v2480_v4 = vpop.f32.mrb[36].mxu0 }
0x2cf8   :  { %v2484_v5 = vadd.f32 %v2480_v4, %v2171_v3  ;;  %v3536_v7 = vpop.f32.mrb[37].mxu0 }
0x2cfa   :  { %3906 = vtanh.f32 %v2484_v5  ;;  %v3108_v11 = vmul.f32 -1.442695, %v2484_v5 }
0x2cfc   :  { %3908 = vpow2.f32 %v3108_v11 }
0x2d04   :  { %v3907_v8 = vpop.eup %3906 }
0x2d05   :  { %2494 = vrot.lane.b32.xlu0 %v3907_v8, %s4009_s23 }
0x2d06   :  { %v3909_v54 = vpop.eup %3908 }
0x2d07   :  { %v2488_v9 = vadd.f32 1.0, %v3909_v54 }
0x2d09   :  { %3910 = vrcp.f32 %v2488_v9 }
0x2d13   :  { %v3911_v6 = vpop.eup %3910 }
0x2d14   :  { %v2492_v38 = vmul.f32 %v3911_v6, %v2401_v39 }
0x2d77   :  { %v2495_v55 = vpop.permute.xlu0 %2494 }
0x2d78   :  { %v2497_v13 = vmul.f32 %v3911_v6, %v2495_v55 }
0x2d7a   :  { %2499 = vrot.lane.b32.xlu1 %v2497_v13, %s4010_s3 }
0x2dec   :  { %v2500_v60 = vpop.permute.xlu1 %2499 }
0x2ded   :  { %v2502_v32 = vadd.f32 %v2500_v60, %v2492_v38  ;;  %v2191_v38 = vadd.f32 %v4487_v51, %v4516_v59 }
0x2def   :  { %3912 = vtanh.f32 %v2502_v32 }
0x2df9   :  { %v3913_v10 = vpop.eup %3912 }
0x2dfa   :  { %2505 = vrot.lane.b32.xlu0 %v3913_v10, %s4009_s23 }
0x2e6c   :  { %v2506_v58 = vpop.permute.xlu0 %2505 }
0x2e6d   :  { %v2508_v12 = vmul.f32 %v3911_v6, %v2506_v58 }
0x2e6f   :  { %2511 = vrot.lane.b32.xlu1 %v2508_v12, %s4010_s3 }
0x2ee1   :  { %v2512_v37 = vpop.permute.xlu1 %2511 }
0x2ee2   :  { %3546 = vmatmul.mubr.msk.f32.vlgmr.msra.gmra.mrb[24].mxu1 %vm230_vm2, %v2512_v37 }
0x2ee3   :  { %3736 = vmatpush3.bf16.msra.mxu1 %v4457_v49  ;;  %3567 = vmatprep.mubr.msk.f32.mxu1 %vm4007_vm0, %v4008_v2 }
0x2ee4   :  { %3737 = vmatprep.subr.bf16.mxu1 %v4006_v1 }
0x2ee7   :  { %3739 = vmatpush3.bf16.msra.mxu1 %v4461_v52 }
0x2ee8   :  { %3746 = vmatprep.subr.bf16.mxu1 %v4006_v1 }
0x2fb5   :  { %v2581_v15 = vpop.f32.mrb[24].mxu1 }
0x2fb6   :  { %v2585_v16 = vadd.f32 %v2581_v15, %v2176_v14  ;;  %v3547_v17 = vpop.f32.mrb[25].mxu1 }
0x2fb8   :  { %3914 = vtanh.f32 %v2585_v16  ;;  %v3110_v19 = vmul.f32 -1.442695, %v2585_v16 }
0x2fba   :  { %3916 = vpow2.f32 %v3110_v19 }
0x2fc2   :  { %v3915_v18 = vpop.eup %3914 }
0x2fc3   :  { %2595 = vrot.lane.b32.xlu0 %v3915_v18, %s4009_s23 }
0x2fc4   :  { %v3917_v20 = vpop.eup %3916 }
0x2fc5   :  { %v2589_v21 = vadd.f32 1.0, %v3917_v20 }
0x2fc7   :  { %3918 = vrcp.f32 %v2589_v21 }
0x2fd1   :  { %v3919_v22 = vpop.eup %3918 }
0x2fd2   :  { %v2593_v25 = vmul.f32 %v3919_v22, %v2502_v32 }
0x3035   :  { %v2596_v23 = vpop.permute.xlu0 %2595 }
0x3036   :  { %v2598_v24 = vmul.f32 %v3919_v22, %v2596_v23 }
0x3038   :  { %2600 = vrot.lane.b32.xlu1 %v2598_v24, %s4010_s3  ;;  %v2196_v24 = vadd.f32 %v4514_v53, %v4487_v51  ;;  %v3119_v51 = vld [vmem:[%s4601_s10] ss:$0 sm:$0xff] }
0x30aa   :  { %v2601_v26 = vpop.permute.xlu1 %2600 }
0x30ab   :  { %v2603_v35 = vadd.f32 %v2601_v26, %v2593_v25 }
0x30ad   :  { %3920 = vtanh.f32 %v2603_v35 }
0x30b7   :  { %v3921_v27 = vpop.eup %3920 }
0x30b8   :  { %2606 = vrot.lane.b32.xlu0 %v3921_v27, %s4009_s23 }
0x312a   :  { %v2607_v28 = vpop.permute.xlu0 %2606 }
0x312b   :  { %v2609_v30 = vmul.f32 %v3919_v22, %v2607_v28 }
0x312d   :  { %2612 = vrot.lane.b32.xlu1 %v2609_v30, %s4010_s3 }
0x319f   :  { %v2613_v31 = vpop.permute.xlu1 %2612 }
0x31a0   :  { %3557 = vmatmul.mubr.msk.f32.vlgmr.msra.gmra.mrb[38].mxu0 %vm230_vm2, %v2613_v31 }
0x31a1   :  { %3742 = vmatpush3.bf16.msra.mxu0 %v4457_v49  ;;  %3578 = vmatprep.mubr.msk.f32.mxu0 %vm4007_vm0, %v4008_v2 }
0x31a2   :  { %3743 = vmatprep.subr.bf16.mxu0 %v4006_v1 }
0x31a5   :  { %3745 = vmatpush3.bf16.msra.mxu0 %v4461_v52 }
0x3273   :  { %v2682_v57 = vpop.f32.mrb[38].mxu0 }
0x3274   :  { %v2686_v61 = vadd.f32 %v2682_v57, %v2181_v40  ;;  %v3558_v41 = vpop.f32.mrb[39].mxu0 }
0x3276   :  { %3922 = vtanh.f32 %v2686_v61  ;;  %v3112_v43 = vmul.f32 -1.442695, %v2686_v61 }
0x3278   :  { %3924 = vpow2.f32 %v3112_v43 }
0x3280   :  { %v3923_v42 = vpop.eup %3922 }
0x3281   :  { %2696 = vrot.lane.b32.xlu0 %v3923_v42, %s4009_s23 }
0x3282   :  { %v3925_v44 = vpop.eup %3924 }
0x3283   :  { %v2690_v45 = vadd.f32 1.0, %v3925_v44 }
0x3285   :  { %3926 = vrcp.f32 %v2690_v45 }
0x328f   :  { %v3927_v29 = vpop.eup %3926 }
0x3290   :  { %v2694_v47 = vmul.f32 %v3927_v29, %v2603_v35 }
0x32f3   :  { %v2697_v46 = vpop.permute.xlu0 %2696 }
0x32f4   :  { %v2699_v33 = vmul.f32 %v3927_v29, %v2697_v46 }
0x32f6   :  { %2701 = vrot.lane.b32.xlu1 %v2699_v33, %s4010_s3 }
0x3368   :  { %v2702_v48 = vpop.permute.xlu1 %2701 }
0x3369   :  { %v2704_v36 = vadd.f32 %v2702_v48, %v2694_v47  ;;  %v3120_v48 = vld [vmem:[#allocation4] ss:$0 sm:$0xff] }
0x336b   :  { %3928 = vtanh.f32 %v2704_v36 }
0x3375   :  { %v3929_v50 = vpop.eup %3928 }
0x3376   :  { %2707 = vrot.lane.b32.xlu0 %v3929_v50, %s4009_s23 }
0x33e8   :  { %v2708_v39 = vpop.permute.xlu0 %2707 }
0x33e9   :  { %v2710_v56 = vmul.f32 %v3927_v29, %v2708_v39 }
0x33eb   :  { %2713 = vrot.lane.b32.xlu1 %v2710_v56, %s4010_s3 }
0x345d   :  { %v2714_v62 = vpop.permute.xlu1 %2713 }
0x345e   :  { %3568 = vmatmul.mubr.msk.f32.vlgmr.msra.gmra.mrb[26].mxu1 %vm230_vm2, %v2714_v62 }
0x345f   :  { %3748 = vmatpush3.bf16.msra.mxu1 %v4457_v49  ;;  %3589 = vmatprep.mubr.msk.f32.mxu1 %vm4007_vm0, %v4008_v2 }
0x3460   :  { %3749 = vmatprep.subr.bf16.mxu1 %v4006_v1 }
0x3463   :  { %3751 = vmatpush3.bf16.msra.mxu1 %v4461_v52 }
0x3531   :  { %v2783_v0 = vpop.f32.mrb[26].mxu1 }
0x3532   :  { %v2787_v3 = vadd.f32 %v2783_v0, %v2186_v63  ;;  %v3569_v4 = vpop.f32.mrb[27].mxu1 }
0x3534   :  { %3930 = vtanh.f32 %v2787_v3  ;;  %v3114_v7 = vmul.f32 -1.442695, %v2787_v3 }
0x3536   :  { %3932 = vpow2.f32 %v3114_v7 }
0x353e   :  { %v3931_v5 = vpop.eup %3930 }
0x353f   :  { %2797 = vrot.lane.b32.xlu0 %v3931_v5, %s4009_s23 }
0x3540   :  { %v3933_v49 = vpop.eup %3932 }
0x3541   :  { %v2791_v8 = vadd.f32 1.0, %v3933_v49 }
0x3543   :  { %3934 = vrcp.f32 %v2791_v8 }
0x354d   :  { %v3935_v2 = vpop.eup %3934 }
0x354e   :  { %v2795_v52 = vmul.f32 %v3935_v2, %v2704_v36 }
0x35b1   :  { %v2798_v11 = vpop.permute.xlu0 %2797 }
0x35b2   :  { %v2800_v1 = vmul.f32 %v3935_v2, %v2798_v11 }
0x35b4   :  { %2802 = vrot.lane.b32.xlu1 %v2800_v1, %s4010_s3 }
0x3626   :  { %v2803_v54 = vpop.permute.xlu1 %2802 }
0x3627   :  { %v2805_v34 = vadd.f32 %v2803_v54, %v2795_v52 }
0x3629   :  { %3936 = vtanh.f32 %v2805_v34 }
0x3633   :  { %v3937_v9 = vpop.eup %3936 }
0x3634   :  { %2808 = vrot.lane.b32.xlu0 %v3937_v9, %s4009_s23 }
0x36a6   :  { %v2809_v6 = vpop.permute.xlu0 %2808 }
0x36a7   :  { %v2811_v55 = vmul.f32 %v3935_v2, %v2809_v6 }
0x36a9   :  { %2814 = vrot.lane.b32.xlu1 %v2811_v55, %s4010_s3 }
0x371b   :  { %v2815_v13 = vpop.permute.xlu1 %2814 }
0x371c   :  { %3579 = vmatmul.mubr.msk.f32.vlgmr.msra.gmra.mrb[40].mxu0 %vm230_vm2, %v2815_v13 }
0x37ef   :  { %v2884_v60 = vpop.f32.mrb[40].mxu0 }
0x37f0   :  { %v2888_v32 = vadd.f32 %v2884_v60, %v2191_v38  ;;  %v3580_v10 = vpop.f32.mrb[41].mxu0 }
0x37f2   :  { %3938 = vtanh.f32 %v2888_v32  ;;  %v3116_v12 = vmul.f32 -1.442695, %v2888_v32 }
0x37f4   :  { %3940 = vpow2.f32 %v3116_v12 }
0x37fc   :  { %v3939_v58 = vpop.eup %3938 }
0x37fd   :  { %2898 = vrot.lane.b32.xlu0 %v3939_v58, %s4009_s23 }
0x37fe   :  { %v3941_v37 = vpop.eup %3940 }
0x37ff   :  { %v2892_v14 = vadd.f32 1.0, %v3941_v37 }
0x3801   :  { %3942 = vrcp.f32 %v2892_v14 }
0x380b   :  { %v3943_v15 = vpop.eup %3942 }
0x380c   :  { %v2896_v18 = vmul.f32 %v3943_v15, %v2805_v34 }
0x386f   :  { %v2899_v16 = vpop.permute.xlu0 %2898 }
0x3870   :  { %v2901_v17 = vmul.f32 %v3943_v15, %v2899_v16 }
0x3872   :  { %2903 = vrot.lane.b32.xlu1 %v2901_v17, %s4010_s3 }
0x38e4   :  { %v2904_v19 = vpop.permute.xlu1 %2903 }
0x38e5   :  { %v2906_v59 = vadd.f32 %v2904_v19, %v2896_v18 }
0x38e7   :  { %3944 = vtanh.f32 %v2906_v59 }
0x38f1   :  { %v3945_v20 = vpop.eup %3944 }
0x38f2   :  { %2909 = vrot.lane.b32.xlu0 %v3945_v20, %s4009_s23 }
0x3964   :  { %v2910_v21 = vpop.permute.xlu0 %2909 }
0x3965   :  { %v2912_v22 = vmul.f32 %v3943_v15, %v2910_v21 }
0x3967   :  { %2915 = vrot.lane.b32.xlu1 %v2912_v22, %s4010_s3 }
0x39d9   :  { %v2916_v23 = vpop.permute.xlu1 %2915 }
0x39da   :  { %3590 = vmatmul.mubr.msk.f32.vlgmr.msra.gmra.mrb[28].mxu1 %vm230_vm2, %v2916_v23 }
0x3aad   :  { %v2985_v25 = vpop.f32.mrb[28].mxu1 }
0x3aae   :  { %v2989_v26 = vadd.f32 %v2985_v25, %v2196_v24  ;;  %v3591_v35 = vpop.f32.mrb[29].mxu1 }
0x3ab0   :  { %3946 = vtanh.f32 %v2989_v26  ;;  %v3118_v28 = vmul.f32 -1.442695, %v2989_v26 }
0x3ab2   :  { %3948 = vpow2.f32 %v3118_v28 }
0x3aba   :  { %v3947_v27 = vpop.eup %3946 }
0x3abb   :  { %2999 = vrot.lane.b32.xlu0 %v3947_v27, %s4009_s23 }
0x3abc   :  { %v3949_v30 = vpop.eup %3948 }
0x3abd   :  { %v2993_v31 = vadd.f32 1.0, %v3949_v30 }
0x3abf   :  { %3950 = vrcp.f32 %v2993_v31 }
0x3ac9   :  { %v3951_v40 = vpop.eup %3950 }
0x3aca   :  { %v2997_v53 = vmul.f32 %v3951_v40, %v2906_v59 }
0x3b2d   :  { %v3000_v57 = vpop.permute.xlu0 %2999 }
0x3b2e   :  { %v3002_v61 = vmul.f32 %v3951_v40, %v3000_v57 }
0x3b30   :  { %3004 = vrot.lane.b32.xlu1 %v3002_v61, %s4010_s3 }
0x3b34   :  { %3020 = vrot.lane.b32.xlu1 %v3119_v51, %s4011_s30 }
0x3ba2   :  { %v3005_v41 = vpop.permute.xlu1 %3004 }
0x3ba3   :  { %v3007_v42 = vadd.f32 %v3005_v41, %v2997_v53 }
0x3ba5   :  { %3952 = vtanh.f32 %v3007_v42 }
0x3ba6   :  { %v3021_v45 = vpop.permute.xlu1 %3020 }
0x3baf   :  { %v3953_v43 = vpop.eup %3952 }
0x3bb0   :  { %3010 = vrot.lane.b32.xlu0 %v3953_v43, %s4009_s23 }
0x3c22   :  { %v3011_v44 = vpop.permute.xlu0 %3010 }
0x3c23   :  { %v3013_v29 = vmul.f32 %v3951_v40, %v3011_v44 }
0x3c25   :  { %v3023_v46 = vmul.f32 %v3021_v45, %v3013_v29 }
0x3c27   :  { %3025 = vrot.lane.b32.xlu0 %v3023_v46, %s4010_s3 }
0x3c99   :  { %v3026_v33 = vpop.permute.xlu0 %3025 }
0x3c9a   :  { %v3028_v47 = vsel %vm230_vm2, %v3026_v33, 0.0 }
0x3c9b   :  { %3029 = vadd.xlane.f32.xlu1 %v3028_v47 }
0x3d28   :  { %v3030_v36 = vpop.xlane.xlu1 %3029 }
0x3d29   :  { %v3038_v50 = vadd.f32 %v3120_v48, %v3030_v36 }
0x3d2b   :  { %3040 = vst.msk [vmem:[%s4603_s12] sm:$0xff] %vm3039_vm3, %v3038_v50 }
0x3d2c   :  { %3045 = vsyncpa [#allocation6], 1 }
0x3d2d   :  { %3046 = vsyncpa [#allocation8], 1 }

</bundles_post_ra>
